<compile_context>
chip_gen: v7x
topology: tpu7x:2x2x1
jax: 0.10.0
libtpu: 0.0.40
codegen_flags: <defaults>
</compile_context>

<pallas_src>
import functools

import jax
import jax.numpy as jnp
from jax.experimental import pallas as pl
from jax.experimental.pallas import tpu as pltpu


def _round_up(x, m):
    return ((x + m - 1) // m) * m


def _cdiv(a, b):
    return (a + b - 1) // b


GATE_LANES = 128  # gate logits live in one trailing lane group of the packed slab


def chosen_experts_kernel(x_ref, slab_ref, be_ref, o_ref, y_acc, *, n_chosen, tn):
    # x_ref    : (tb, tk)                     bf16 activations
    # slab_ref : (1, tk, n*tn + GATE_LANES)   bf16 packed expert weights for this D_out tile,
    #                                         gate weight folded into cols [n*tn, n*tn+n)
    # be_ref   : (1, n, tn)                   f32 packed expert biases for this D_out tile
    # o_ref    : (tb, tn)
    # y_acc    : (tb, n*tn + GATE_LANES) f32  K accumulator (VMEM scratch)
    k = pl.program_id(2)

    @pl.when(k == 0)
    def _init():
        y_acc[...] = jnp.zeros_like(y_acc)

    # Single lane-dense MXU pass: all n experts AND the gate logits at once,
    # bf16 inputs with f32 accumulation.
    y_acc[...] += jnp.dot(x_ref[...], slab_ref[0],
                          preferred_element_type=jnp.float32)

    @pl.when(k == pl.num_programs(2) - 1)
    def _finish():
        y = y_acc[...]                                     # (tb, n*tn + GATE_LANES) f32
        g0 = n_chosen * tn
        logits = y[:, g0:g0 + n_chosen]                    # (tb, n) f32

        # softmax over the expert axis (PyTorch dim=1), fully in f32, exact division
        m = jnp.max(logits, axis=-1, keepdims=True)
        e = jnp.exp(logits - m)
        gate = e / jnp.sum(e, axis=-1, keepdims=True)      # (tb, n) f32

        be = be_ref[0]                                     # (n, tn) f32
        acc = jnp.zeros((y.shape[0], tn), jnp.float32)
        for i in range(n_chosen):                          # small static unroll, pure VPU
            acc = acc + gate[:, i:i + 1] * (y[:, i * tn:(i + 1) * tn] + be[i:i + 1, :])
        o_ref[...] = acc.astype(o_ref.dtype)


def chosen_experts(x, wg_t, we, be, *, tb_max=None, tn=None, tk_max=512):
    """x: (B, D_in); wg_t: (D_in, n) gate weight (transposed, no bias);
    we: (n, D_in, D_out) expert weights; be: (n, D_out) expert biases."""
    B, D_in = x.shape
    n, _, D_out = we.shape
    assert wg_t.shape == (D_in, n)
    assert be.shape == (n, D_out)
    assert n <= GATE_LANES, "n_chosen must fit in one lane group"

    out_dtype = x.dtype
    mxu_dtype = jnp.bfloat16          # bf16 on the MXU, f32 accumulation

    # --- hardware-aware defaults -------------------------------------------------
    try:
        vmem_phys = int(pltpu.get_tpu_info().vmem_capacity_bytes)
    except Exception:
        vmem_phys = 64 << 20                                 # conservative (v7x per-TC)
    vmem_cap = (vmem_phys * 3) // 4                          # leave compiler headroom
    if tb_max is None:
        tb_max = 512 if vmem_phys >= (96 << 20) else 256     # v5e/v6e: 512, v7x: 256

    # --- batch tile: minimize ragged-B padding, keep bf16 sublane pack (16) -------
    sub = 16
    n_btiles = _cdiv(B, tb_max)
    tb = _round_up(_cdiv(B, n_btiles), sub)
    B_pad = _round_up(B, tb)

    # --- D_out: zero-pad to a lane-dense multiple of 128 (unmasked stores) --------
    D_out_pad = _round_up(D_out, 128)
    if tn is None:
        tn = 256 if D_out_pad % 256 == 0 else 128
    assert D_out_pad % tn == 0 and tn % 128 == 0
    num_j = D_out_pad // tn

    # --- D_in (K): untiled while small, otherwise tiled + accumulated -------------
    tk = tk_max if D_in > 1024 else _round_up(D_in, sub)
    D_in_pad = _round_up(D_in, tk)
    num_k = D_in_pad // tk

    # --- host-side packing ---------------------------------------------------------
    x_p = jnp.pad(x, ((0, B_pad - B), (0, D_in_pad - D_in))).astype(mxu_dtype)

    we_pad = jnp.pad(we, ((0, 0), (0, D_in_pad - D_in), (0, D_out_pad - D_out)))
    # slab[j][:, i*tn:(i+1)*tn] == we[i, :, j*tn:(j+1)*tn]
    we_p = (we_pad.reshape(n, D_in_pad, num_j, tn)
                  .transpose(2, 1, 0, 3)
                  .reshape(num_j, D_in_pad, n * tn))
    # fold the (bias-free) gate weight into the slab's trailing lane group
    gcols = jnp.zeros((D_in_pad, GATE_LANES), we.dtype)
    gcols = gcols.at[:D_in, :n].set(wg_t.astype(we.dtype))
    slab = jnp.concatenate(
        [we_p, jnp.broadcast_to(gcols[None], (num_j, D_in_pad, GATE_LANES))],
        axis=-1).astype(mxu_dtype)                                  # (num_j, D_in_pad, W)
    W = n * tn + GATE_LANES

    be_pad = jnp.pad(be, ((0, 0), (0, D_out_pad - D_out))).astype(jnp.float32)
    be_p = be_pad.reshape(n, num_j, tn).transpose(1, 0, 2)          # (num_j, n, tn)

    grid = (num_j, B_pad // tb, num_k)   # weight slab resident across b when num_k == 1

    # --- VMEM budget: double-buffered blocks + K accumulator + headroom -----------
    def itm(d):
        return jnp.dtype(d).itemsize
    block_bytes = (tb * tk * itm(mxu_dtype)            # x tile
                   + tk * W * itm(mxu_dtype)           # packed weight slab tile
                   + n * tn * 4                        # bias tile (f32)
                   + tb * tn * itm(out_dtype))         # output tile
    need = 2 * block_bytes + tb * W * 4 + (4 << 20)
    vmem_limit = int(min(max(need, 32 << 20), vmem_cap))

    # --- advisory cost estimate ----------------------------------------------------
    flops = 2 * B_pad * D_in_pad * num_j * W + 4 * B_pad * n * D_out_pad
    bytes_accessed = (num_j * B_pad * D_in_pad * itm(mxu_dtype)      # x restreamed per j
                      + (B_pad // tb if num_k > 1 else 1) * slab.size * itm(mxu_dtype)
                      + be_p.size * 4
                      + B_pad * D_out_pad * itm(out_dtype))
    cost = pl.CostEstimate(flops=int(flops),
                           transcendentals=int(B_pad * n * num_j),
                           bytes_accessed=int(bytes_accessed))

    kernel = functools.partial(chosen_experts_kernel, n_chosen=n, tn=tn)

    out = pl.pallas_call(
        kernel,
        out_shape=jax.ShapeDtypeStruct((B_pad, D_out_pad), out_dtype),
        grid_spec=pltpu.PrefetchScalarGridSpec(
            num_scalar_prefetch=0,
            grid=grid,
            in_specs=[
                pl.BlockSpec((tb, tk), lambda j, b, k: (b, k)),        # activations
                pl.BlockSpec((1, tk, W), lambda j, b, k: (j, k, 0)),   # packed expert + gate W
                pl.BlockSpec((1, n, tn), lambda j, b, k: (j, 0, 0)),   # packed expert biases
            ],
            out_specs=pl.BlockSpec((tb, tn), lambda j, b, k: (b, j)),
            scratch_shapes=[pltpu.VMEM((tb, W), jnp.float32)],
        ),
        compiler_params=pltpu.CompilerParams(
            dimension_semantics=("parallel", "parallel", "arbitrary"),
            vmem_limit_bytes=vmem_limit,
        ),
        cost_estimate=cost,
    )(x_p, slab, be_p)

    if B_pad != B or D_out_pad != D_out:
        out = out[:B, :D_out]
    return out


def reference(x, wg_t, we, be):
    """Pure-JAX reference using the same bf16-input / f32-accumulate math as the kernel."""
    xb = x.astype(jnp.bfloat16)
    logits = jnp.dot(xb, wg_t.astype(jnp.bfloat16),
                     preferred_element_type=jnp.float32)               # (B, n)
    m = jnp.max(logits, axis=-1, keepdims=True)
    e = jnp.exp(logits - m)
    gate = e / jnp.sum(e, axis=-1, keepdims=True)                      # exact softmax, f32
    eo = jnp.stack(
        [jnp.dot(xb, we[i].astype(jnp.bfloat16), preferred_element_type=jnp.float32)
         + be[i].astype(jnp.float32)
         for i in range(we.shape[0])], axis=1)                         # (B, n, D_out) f32
    out = jnp.sum(gate[:, :, None] * eo, axis=1)                       # f32 combine (no matmul)
    return out.astype(x.dtype)


if __name__ == "__main__":
    # Small demo shapes that exercise ragged batch (200 -> tb=208), D_out padding
    # (320 -> 384, tn=128, 3 output tiles) and non-power-of-two D_in.
    B, D_in, D_out, n_chosen = 200, 96, 320, 4

    key = jax.random.PRNGKey(0)
    k_x, k_wg, k_we, k_be = jax.random.split(key, 4)

    x = jax.random.normal(k_x, (B, D_in), dtype=jnp.float32)
    # PyTorch gate Linear weight is (n_chosen, D_in); we pass it transposed.
    wg = jax.random.normal(k_wg, (n_chosen, D_in), dtype=jnp.float32) * 0.1
    wg_t = wg.T                                                        # (D_in, n)
    # Each expert: Linear(D_in, D_out); PyTorch weight (D_out, D_in) stored as (D_in, D_out).
    we = jax.random.normal(k_we, (n_chosen, D_in, D_out), dtype=jnp.float32) * 0.1
    be = jax.random.normal(k_be, (n_chosen, D_out), dtype=jnp.float32) * 0.1

    out = jax.block_until_ready(chosen_experts(x, wg_t, we, be))
    ref = jax.block_until_ready(reference(x, wg_t, we, be))

    assert out.shape == (B, D_out)
    max_err = float(jnp.max(jnp.abs(out - ref)))
    assert jnp.allclose(out, ref, atol=2e-2, rtol=2e-2), \
        f"mismatch vs reference (max abs err {max_err})"
    print("KERNEL_OK")
</pallas_src>

<mosaic_0001>
module attributes {stable_mosaic.version = 11 : i64} {
  func.func @chosen_experts_kernel(%arg0: i32, %arg1: i32, %arg2: i32, %arg3: memref<208x96xbf16, #tpu.memory_space<vmem>>, %arg4: memref<1x96x640xbf16, #tpu.memory_space<vmem>>, %arg5: memref<1x4x128xf32, #tpu.memory_space<vmem>>, %arg6: memref<208x128xf32, #tpu.memory_space<vmem>>, %arg7: memref<208x640xf32, #tpu.memory_space<vmem>>) attributes {dimension_semantics = [#tpu.dimension_semantics<parallel>, #tpu.dimension_semantics<parallel>, #tpu.dimension_semantics<arbitrary>], iteration_bounds = array<i64: 3, 1, 1>, scalar_prefetch = 0 : i64, scratch_operands = 1 : i64, tpu.core_type = #tpu.core_type<tc>, window_params = [{transform_indices = @transform_0, window_bounds = array<i64: 208, 96>}, {transform_indices = @transform_1, window_bounds = array<i64: 1, 96, 640>}, {transform_indices = @transform_2, window_bounds = array<i64: 1, 4, 128>}, {transform_indices = @transform_3, window_bounds = array<i64: 208, 128>}]} {
    %c0_i32 = arith.constant 0 : i32
    %0 = arith.cmpi eq, %arg2, %c0_i32 : i32
    %1 = arith.extui %0 : i1 to i32
    %c0_i32_0 = arith.constant 0 : i32
    %2 = arith.cmpi ne, %1, %c0_i32_0 : i32
    scf.if %2 {
      %cst_11 = arith.constant 0.000000e+00 : f32
      %13 = vector.broadcast %cst_11 : f32 to vector<208x640xf32>
      %c0_12 = arith.constant 0 : index
      %c0_13 = arith.constant 0 : index
      %14 = vector.load %arg7[%c0_12, %c0_13] : memref<208x640xf32, #tpu.memory_space<vmem>>, vector<208x640xf32>
      tpu.vector_store %arg7[%c0_12, %c0_13], %13 {strides = array<i32>} : memref<208x640xf32, #tpu.memory_space<vmem>>, vector<208x640xf32>,
    } else {
    }
    %c0 = arith.constant 0 : index
    %c0_1 = arith.constant 0 : index
    %3 = vector.load %arg7[%c0, %c0_1] : memref<208x640xf32, #tpu.memory_space<vmem>>, vector<208x640xf32>
    %c0_2 = arith.constant 0 : index
    %c0_3 = arith.constant 0 : index
    %4 = vector.load %arg3[%c0_2, %c0_3] : memref<208x96xbf16, #tpu.memory_space<vmem>>, vector<208x96xbf16>
    %c0_4 = arith.constant 0 : index
    %c0_5 = arith.constant 0 : index
    %c0_6 = arith.constant 0 : index
    %5 = vector.load %arg4[%c0_4, %c0_5, %c0_6] : memref<1x96x640xbf16, #tpu.memory_space<vmem>>, vector<1x96x640xbf16>
    %6 = vector.shape_cast %5 : vector<1x96x640xbf16> to vector<96x640xbf16>
    %cst = arith.constant dense<0.000000e+00> : vector<208x640xf32>
    %7 = tpu.matmul %4, %6, %cst {dimension_numbers = #tpu.dot_dimension_numbers<[1], [0], [0], [1], [0, 0, 1, 1], [], []>} : vector<208x96xbf16>, vector<96x640xbf16>, vector<208x640xf32> -> vector<208x640xf32>
    %8 = arith.addf %3, %7 : vector<208x640xf32>
    %c0_7 = arith.constant 0 : index
    %c0_8 = arith.constant 0 : index
    %9 = vector.load %arg7[%c0_7, %c0_8] : memref<208x640xf32, #tpu.memory_space<vmem>>, vector<208x640xf32>
    tpu.vector_store %arg7[%c0_7, %c0_8], %8 {strides = array<i32>} : memref<208x640xf32, #tpu.memory_space<vmem>>, vector<208x640xf32>,
    %c0_i32_9 = arith.constant 0 : i32
    %10 = arith.cmpi eq, %arg2, %c0_i32_9 : i32
    %11 = arith.extui %10 : i1 to i32
    %c0_i32_10 = arith.constant 0 : i32
    %12 = arith.cmpi ne, %11, %c0_i32_10 : i32
    scf.if %12 {
      %c0_11 = arith.constant 0 : index
      %c0_12 = arith.constant 0 : index
      %13 = vector.load %arg7[%c0_11, %c0_12] : memref<208x640xf32, #tpu.memory_space<vmem>>, vector<208x640xf32>
      %14 = vector.extract_strided_slice %13 {offsets = [0, 512], sizes = [208, 4], strides = [1, 1]} : vector<208x640xf32> to vector<208x4xf32>
      %cst_13 = arith.constant dense<0xFF800000> : vector<208xf32>
      %15 = vector.multi_reduction <maximumf>, %14, %cst_13 [1] : vector<208x4xf32> to vector<208xf32>
      %16 = vector.shape_cast %15 : vector<208xf32> to vector<208x1xf32>
      %17 = vector.broadcast %16 : vector<208x1xf32> to vector<208x4xf32>
      %18 = arith.subf %14, %17 : vector<208x4xf32>
      %19 = math.exp %18 : vector<208x4xf32>
      %cst_14 = arith.constant dense<0.000000e+00> : vector<208xf32>
      %20 = vector.multi_reduction <add>, %19, %cst_14 [1] : vector<208x4xf32> to vector<208xf32>
      %21 = vector.shape_cast %20 : vector<208xf32> to vector<208x1xf32>
      %22 = vector.broadcast %21 : vector<208x1xf32> to vector<208x4xf32>
      %23 = arith.divf %19, %22 : vector<208x4xf32>
      %c0_15 = arith.constant 0 : index
      %c0_16 = arith.constant 0 : index
      %c0_17 = arith.constant 0 : index
      %24 = vector.load %arg5[%c0_15, %c0_16, %c0_17] : memref<1x4x128xf32, #tpu.memory_space<vmem>>, vector<1x4x128xf32>
      %25 = vector.shape_cast %24 : vector<1x4x128xf32> to vector<4x128xf32>
      %cst_18 = arith.constant 0.000000e+00 : f32
      %26 = vector.broadcast %cst_18 : f32 to vector<208x128xf32>
      %27 = vector.extract_strided_slice %23 {offsets = [0, 0], sizes = [208, 1], strides = [1, 1]} : vector<208x4xf32> to vector<208x1xf32>
      %28 = vector.extract_strided_slice %13 {offsets = [0, 0], sizes = [208, 128], strides = [1, 1]} : vector<208x640xf32> to vector<208x128xf32>
      %29 = vector.extract_strided_slice %25 {offsets = [0, 0], sizes = [1, 128], strides = [1, 1]} : vector<4x128xf32> to vector<1x128xf32>
      %30 = vector.broadcast %29 : vector<1x128xf32> to vector<208x128xf32>
      %31 = arith.addf %28, %30 : vector<208x128xf32>
      %32 = vector.broadcast %27 : vector<208x1xf32> to vector<208x128xf32>
      %33 = arith.mulf %32, %31 : vector<208x128xf32>
      %34 = arith.addf %26, %33 : vector<208x128xf32>
      %35 = vector.extract_strided_slice %23 {offsets = [0, 1], sizes = [208, 1], strides = [1, 1]} : vector<208x4xf32> to vector<208x1xf32>
      %36 = vector.extract_strided_slice %13 {offsets = [0, 128], sizes = [208, 128], strides = [1, 1]} : vector<208x640xf32> to vector<208x128xf32>
      %37 = vector.extract_strided_slice %25 {offsets = [1, 0], sizes = [1, 128], strides = [1, 1]} : vector<4x128xf32> to vector<1x128xf32>
      %38 = vector.broadcast %37 : vector<1x128xf32> to vector<208x128xf32>
      %39 = arith.addf %36, %38 : vector<208x128xf32>
      %40 = vector.broadcast %35 : vector<208x1xf32> to vector<208x128xf32>
      %41 = arith.mulf %40, %39 : vector<208x128xf32>
      %42 = arith.addf %34, %41 : vector<208x128xf32>
      %43 = vector.extract_strided_slice %23 {offsets = [0, 2], sizes = [208, 1], strides = [1, 1]} : vector<208x4xf32> to vector<208x1xf32>
      %44 = vector.extract_strided_slice %13 {offsets = [0, 256], sizes = [208, 128], strides = [1, 1]} : vector<208x640xf32> to vector<208x128xf32>
      %45 = vector.extract_strided_slice %25 {offsets = [2, 0], sizes = [1, 128], strides = [1, 1]} : vector<4x128xf32> to vector<1x128xf32>
      %46 = vector.broadcast %45 : vector<1x128xf32> to vector<208x128xf32>
      %47 = arith.addf %44, %46 : vector<208x128xf32>
      %48 = vector.broadcast %43 : vector<208x1xf32> to vector<208x128xf32>
      %49 = arith.mulf %48, %47 : vector<208x128xf32>
      %50 = arith.addf %42, %49 : vector<208x128xf32>
      %51 = vector.extract_strided_slice %23 {offsets = [0, 3], sizes = [208, 1], strides = [1, 1]} : vector<208x4xf32> to vector<208x1xf32>
      %52 = vector.extract_strided_slice %13 {offsets = [0, 384], sizes = [208, 128], strides = [1, 1]} : vector<208x640xf32> to vector<208x128xf32>
      %53 = vector.extract_strided_slice %25 {offsets = [3, 0], sizes = [1, 128], strides = [1, 1]} : vector<4x128xf32> to vector<1x128xf32>
      %54 = vector.broadcast %53 : vector<1x128xf32> to vector<208x128xf32>
      %55 = arith.addf %52, %54 : vector<208x128xf32>
      %56 = vector.broadcast %51 : vector<208x1xf32> to vector<208x128xf32>
      %57 = arith.mulf %56, %55 : vector<208x128xf32>
      %58 = arith.addf %50, %57 : vector<208x128xf32>
      %c0_19 = arith.constant 0 : index
      %c0_20 = arith.constant 0 : index
      %59 = vector.load %arg6[%c0_19, %c0_20] : memref<208x128xf32, #tpu.memory_space<vmem>>, vector<208x128xf32>
      tpu.vector_store %arg6[%c0_19, %c0_20], %58 {strides = array<i32>} : memref<208x128xf32, #tpu.memory_space<vmem>>, vector<208x128xf32>,
    } else {
    }
    return
  }
  func.func @transform_0(%arg0: i32, %arg1: i32, %arg2: i32) -> (i32, i32) {
    %c0_i32 = arith.constant 0 : i32
    return %arg1, %arg2 : i32, i32
  }
  func.func @transform_1(%arg0: i32, %arg1: i32, %arg2: i32) -> (i32, i32, i32) {
    %c0_i32 = arith.constant 0 : i32
    %c0_i32_0 = arith.constant 0 : i32
    return %arg0, %arg2, %c0_i32 : i32, i32, i32
  }
  func.func @transform_2(%arg0: i32, %arg1: i32, %arg2: i32) -> (i32, i32, i32) {
    %c0_i32 = arith.constant 0 : i32
    %c0_i32_0 = arith.constant 0 : i32
    %c0_i32_1 = arith.constant 0 : i32
    return %arg0, %c0_i32, %c0_i32_0 : i32, i32, i32
  }
  func.func @transform_3(%arg0: i32, %arg1: i32, %arg2: i32) -> (i32, i32) {
    %c0_i32 = arith.constant 0 : i32
    return %arg1, %arg0 : i32, i32
  }
}

</mosaic_0001>

<bundles_post_ra>
// kernel: tpu_custom_call.1
= control target key start
LH: loop header
LB: loop body
LE: loop exit
PB: predicated region body
PF: predicated region fallthrough
CT: control target
= control target key end

     0   :  { %8 = vsyncpa [#allocation4], 0  ;;  %s5038_s0 = inlined_call_operand.vmem [shape: bf16[208,96], index: 0, kind: input, shape index: {}]   ;;  %s5039_s1 = inlined_call_operand.hbm [shape: bf16[3,96,640], index: 1, kind: input, shape index: {}]   ;;  %s5040_s2 = inlined_call_operand.vmem [shape: f32[3,4,128], index: 2, kind: input, shape index: {}]   ;;  %s5041_s3 = inlined_call_operand.hbm [shape: f32[208,384], index: 3, kind: output, shape index: {}]  }
   0x1   :  { %10 = vsyncpa [#allocation4 + $0x1], 0 }
   0x2   :  { %11 = vsyncpa [#allocation5], 0 }
   0x3   :  { %13 = vsyncpa [#allocation5 + $0x1], 0  ;;  %s3605_s12 = smov 0   ;;  %s3607_s13 = smov 0  }
   0x4   :  { %s3609_s14 = smov 0   ;;  %s3611_s15 = smov 0  }
   0x5   :  { %s3613_s16 = smov 0   ;;  %s3615_s17 = smov 0  }
   0x6 LB: > { %s2930_s18 = sadd.s32 4294967295, %s3570_s17   ;;  %s2931_s19 = sadd.s32 4294967294, %s3570_s17   ;;  %s3570_s17 = sphi %s3615_s17, %s19_s17   ;;  %s3566_s16 = sphi %s3613_s16, %s5194_s16   ;;  %s3562_s15 = sphi %s3611_s15, %s5193_s15   ;;  %s3558_s14 = sphi %s3609_s14, %s5192_s14   ;;  %s3554_s13 = sphi %s3607_s13, %s5191_s13   ;;  %s3550_s12 = sphi %s3605_s12, %s5190_s12  }
   0x7   : > { %s38_s20 = sadd.s32 1, %s3566_s16  ;;  %s75_s21 = sadd.s32 1, %s3558_s14 }
   0x8   : > { %p40_p0 = scmp.ge.s32.totalorder %s38_s20, 3  ;;  %p82_p1 = scmp.ne.s32.totalorder %s3558_s14, %s3554_s13 }
   0x9   : > { %p83_p2 = scmp.eq.s32.totalorder %s3570_s17, 0  ;;  %p88_p3 = scmp.ne.s32.totalorder %s3554_s13, %s3550_s12 }
   0xa   : > { %s5196_s20 = smov (%p40_p0, %s38_s20), 0  ;;  %p89_p5 = scmp.eq.s32.totalorder %s2930_s18, 0 }
   0xb   : > { %p3646_p4 = por %p83_p2, %p82_p1  ;;  %s70_s23 = ssub.s32 %s3566_s16, %s5196_s20 }
   0xc   : > { %p140_p6 = scmp.eq.s32.totalorder %s2930_s18, 2  ;;  %p73_p7 = scmp.eq.s32.totalorder %s70_s23, 0 }
   0xd   : > { %p3652_p8 = por %p89_p5, %p88_p3  ;;  %p146_p10 = scmp.eq.s32.totalorder %s2931_s19, 2 }
   0xe   : > { %p3656_p9 = por %p140_p6, %p82_p1  ;;  %p3134_p12 = scmp.lt.s32.totalorder %s3570_s17, 3 }
   0xf   : > { %s3661_s26 = scalar_select %p73_p7, %s3558_s14, %s75_s21  }
  0x10   : > { %s5056_s25 = scalar_select %p3656_p9, 1, 0 }
  0x11   : > { %p3663_p11 = por %p146_p10, %p88_p3  ;;  %s178_s28 = sand.u32 1, %s3558_s14  }
  0x12   : > { %s3118_s29 = smul.u32 240, %s178_s28  ;;  %p3672_p13 = pnand %p3134_p12, %p3646_p4 }
  0x13   : > { %s5057_s27 = scalar_select %p3663_p11, 1, 0 }
  0x14   : > { %s3119_s30 = smul.u32 3840, %s3566_s16  ;;  %s182_s8 = scalar_lea.vmem [#allocation3], %s3118_s29 }
  0x15   : > { %s192_s9 = sshll.u32 %s182_s8, 4  ;;  %s3684_s10 = scalar_lea.sflag [#allocation4], %s178_s28  ;;  %s3681_s9 = int_to_ptr.vmem [resolvable:$true] %s192_s9 }
  0x16   : > { %s3679_s7 = scalar_lea.hbm %s5039_s1, %s3119_s30  ;;  %p3460_p2 = pneg %p3672_p13 }
  0x17   : > { %s3458_s11 = scalar_lea.hbm %s3679_s7, 3840  ;;  %s3463_s21 = scalar_lea.hbm %s5039_s1, 11520 }
  0x18   : > { %p3459_p1 = scmp.ne.s32.totalorder %s3679_s7, %s3458_s11  ;;  %p3464_p5 = scmp.lt.u32.totalorder %s3679_s7, %s5039_s1 }
  0x19   : > { %p3465_p6 = scmp.lt.u32.totalorder %s3463_s21, %s3458_s11  ;;  %p3467_p10 = scmp.lt.u32.totalorder %s3458_s11, %s3679_s7 }
  0x1a   : > { %p3461_p3 = pnand %p3460_p2, %p3459_p1 }
  0x1b   : > { %p3466_p7 = por %p3465_p6, %p3464_p5 }
  0x1c   : > { %p3462_p4 = pneg %p3461_p3 }
  0x1d   : > { %p3468_p12 = por %p3467_p10, %p3466_p7 }
  0x1f   : > { %p3469_p0 = pnand %p3468_p12, %p3462_p4 }
  0x21   : > { %3472 = shalt.err (!%p3469_p0)
}
  0x22   : > { %s3473_s28 = scalar_lea.vmem %s3681_s9, 3840  ;;  %s3572_s29 = smov [#allocation3]  }
  0x23   : > { %p3474_p1 = scmp.ne.s32.totalorder %s3681_s9, %s3473_s28  ;;  %s3478_s30 = sshll.u32 %s3572_s29, 4  ;;  %s3479_s30 = int_to_ptr.vmem [resolvable:$false] %s3478_s30 }
  0x24   : > { %s3480_s5 = scalar_lea.vmem %s3479_s30, 7680  ;;  %p3481_p9 = scmp.lt.s32.totalorder %s3681_s9, %s3479_s30 }
  0x25   : > { %p3476_p3 = pnand %p3474_p1, %p3460_p2  ;;  %p3482_p5 = scmp.lt.s32.totalorder %s3480_s5, %s3473_s28 }
  0x27   : > { %p3477_p11 = pneg %p3476_p3  ;;  %p3483_p6 = por %p3482_p5, %p3481_p9 }
  0x29   : > { %p3484_p7 = pnand %p3483_p6, %p3477_p11 }
  0x2b   : > { %3487 = shalt.err (!%p3484_p7)
}
  0x2c   : > { %s3573_s6 = smov 320   ;;  %s3574_s8 = smov 20  }
  0x2d   : > { %3129 = dma.hbm_to_vmem [thread:$0]  (!%p3672_p13), %s3679_s7, 3840, %s3681_s9, %s3684_s10, %s3573_s6, %s3573_s6, %s3574_s8  }
  0x2e   : > { %p207_p0 = scmp.lt.s32.totalorder %s3570_s17, 4  ;;  %p5059_p2 = scmp.ge.s32.totalorder %s3570_s17, 1 }
  0x30   : > { %p208_p4 = pnand %p5059_p2, %p207_p0 }
  0x32   : > { %211 = sbr.rel (%p208_p4) target bundleno = 1098 (0x44a), region = 32 }
  0x39   : > { %s3716_s11 = sand.u32 1, %s3554_s13  }
  0x3a   : > { %s3120_s18 = smul.u32 240, %s3716_s11  ;;  %s214_s19 = scalar_lea.sflag [#allocation4], %s3716_s11 }
  0x3c   : > { %s3720_s21 = scalar_lea.vmem [#allocation3], %s3120_s18 }
  0x3d   : > { %3541 = dma.done.wait (%p3652_p8), %s214_s19, 3840  }
  0x3e   : > { %3543 = vsyncadd (%p3652_p8), %s214_s19, 4294963456  ;;  %v5043_v0 = vmov 0   ;;  %v3299_v1 = vld [vmem:[%s3720_s21 + $0x4] ss:$20 sps:$4 sm:$0xff]   ;;  %v3301_v2 = vld [vmem:[%s3720_s21] ss:$20 sps:$4 sm:$0xff]  }
  0x3f   : > { %887 = vmatprep.mubr.bf16.mxu0 %v5043_v0  ;;  %957 = vmatprep.mubr.bf16.mxu1 %v5043_v0  ;;  %v3302_v3 = vld [vmem:[%s3720_s21 + $0x2c] ss:$20 sps:$4 sm:$0xff]   ;;  %v3304_v4 = vld [vmem:[%s3720_s21 + $0x28] ss:$20 sps:$4 sm:$0xff]   ;;  %v3307_v6 = vld [vmem:[%s3720_s21 + $0x50] ss:$20 sps:$4 sm:$0xff]  }
  0x40   : > { %3195 = vset.pattern.permute.xlu0 %v5043_v0  ;;  %855 = vmatprep.subr.bf16.mxu0 %v3299_v1  ;;  %v3305_v5 = vld [vmem:[%s3720_s21 + $0x54] ss:$20 sps:$4 sm:$0xff]   ;;  %v3308_v7 = vld [vmem:[%s3720_s21 + $0x7c] ss:$20 sps:$4 sm:$0xff]   ;;  %v3310_v8 = vld [vmem:[%s3720_s21 + $0x78] ss:$20 sps:$4 sm:$0xff]  }
  0x41   : > { %3106 = vmatprep.subr.bf16.mxu1 %v3299_v1  ;;  %856 = vmatpush1.bf16.msra.mxu0 %v3301_v2  ;;  %v3311_v9 = vld [vmem:[%s3720_s21 + $0xa4] ss:$20 sps:$4 sm:$0xff]   ;;  %v3313_v10 = vld [vmem:[%s3720_s21 + $0xa0] ss:$20 sps:$4 sm:$0xff]   ;;  %v3316_v12 = vld [vmem:[%s3720_s21 + $0xc8] ss:$20 sps:$4 sm:$0xff]  }
  0x42   : > { %3112 = vmatpush1.bf16.msra.mxu1 %v3301_v2  ;;  %857 = vmatprep.subr.bf16.mxu0 %v3302_v3  ;;  %v3314_v11 = vld [vmem:[%s3720_s21 + $0xcc] ss:$20 sps:$4 sm:$0xff]   ;;  %v3318_v14 = vld [vmem:[%s3720_s21 + $0x10] ss:$20 sps:$4 sm:$0xff]   ;;  %vm815_vm0 = vcmask 785408   ;;  %v3576_v16 = vmov 0.0  }
  0x43   : > { %3107 = vmatprep.subr.bf16.mxu1 %v3302_v3  ;;  %v3744_v13 = vld [vmem:[%s5038_s0] sm:$0xff]   ;;  %v3750_v15 = vld [vmem:[%s5038_s0 + $0x38] sm:$0xff]   ;;  %v3764_v18 = vld [vmem:[%s5038_s0 + $0x8] sm:$0xff]   ;;  %vm3577_vm1 = vmmov 0   ;;  %vm1711_vm2 = vcmask 31744   ;;  %p262_p8 = scmp.lt.s32.totalorder %s3562_s15, 2 }
  0x44   : > { %v3320_v17 = vld [vmem:[%s3720_s21 + $0x38] ss:$20 sps:$4 sm:$0xff]   ;;  %v3322_v19 = vld [vmem:[%s3720_s21 + $0x60] ss:$20 sps:$4 sm:$0xff]   ;;  %v3324_v21 = vld [vmem:[%s3720_s21 + $0x88] ss:$20 sps:$4 sm:$0xff]  }
  0x45   : > { %858 = vmatpush1.bf16.msra.mxu0 %v3304_v4  ;;  %v3771_v20 = vld [vmem:[%s5038_s0 + $0x40] sm:$0xff]   ;;  %v3784_v22 = vld [vmem:[%s5038_s0 + $0x10] sm:$0xff]   ;;  %v3326_v23 = vld [vmem:[%s3720_s21 + $0xb0] ss:$20 sps:$4 sm:$0xff]   ;;  %s3121_s24 = smul.u32 208, %s3716_s11  ;;  %s3020_s7 = sshll.u32 %s3562_s15, 7 }
  0x46   : > { %3113 = vmatpush1.bf16.msra.mxu1 %v3304_v4  ;;  %859 = vmatprep.subr.bf16.mxu0 %v3305_v5  ;;  %v3791_v24 = vld [vmem:[%s5038_s0 + $0x48] sm:$0xff]   ;;  %v3329_v25 = vld [vmem:[%s3720_s21 + $0xd8] ss:$20 sps:$4 sm:$0xff]   ;;  %v3804_v26 = vld [vmem:[%s5038_s0 + $0x18] sm:$0xff]   ;;  %s4987_s23 = scalar_lea.hbm %s5041_s3, %s3020_s7  ;;  %p5188_p11 = scmp.ne.s32.totalorder %s5056_s25, 0 }
  0x47   : > { %3108 = vmatprep.subr.bf16.mxu1 %v3305_v5  ;;  %v3809_v27 = vld [vmem:[%s5038_s0 + $0x50] sm:$0xff]   ;;  %v3820_v28 = vld [vmem:[%s5038_s0 + $0x20] sm:$0xff]   ;;  %v3825_v29 = vld [vmem:[%s5038_s0 + $0x58] sm:$0xff]   ;;  %s4532_s4 = scalar_lea.vmem [#allocation6], %s3121_s24  ;;  %s3581_s29 = smov [#allocation6]  }
  0x48   : > { %v3836_v30 = vld [vmem:[%s5038_s0 + $0x28] sm:$0xff]   ;;  %v3841_v31 = vld [vmem:[%s5038_s0 + $0x60] sm:$0xff]   ;;  %v3852_v32 = vld [vmem:[%s5038_s0 + $0x30] sm:$0xff]   ;;  %s2811_s9 = sshll.u32 %s4532_s4, 4  ;;  %s3492_s30 = sshll.u32 %s3581_s29, 4  ;;  %s4989_s9 = int_to_ptr.vmem [resolvable:$true] %s2811_s9  ;;  %s3493_s30 = int_to_ptr.vmem [resolvable:$false] %s3492_s30 }
  0x49   : > { %860 = vmatpush1.bf16.msra.mxu0 %v3307_v6  ;;  %s3488_s28 = scalar_lea.vmem %s4989_s9, 3328  ;;  %s3494_s5 = scalar_lea.vmem %s3493_s30, 6656 }
  0x4a   : > { %3114 = vmatpush1.bf16.msra.mxu1 %v3307_v6  ;;  %861 = vmatprep.subr.bf16.mxu0 %v3308_v7  ;;  %p3489_p9 = scmp.ne.s32.totalorder %s4989_s9, %s3488_s28  ;;  %p3495_p12 = scmp.lt.s32.totalorder %s4989_s9, %s3493_s30 }
  0x4b   : > { %3109 = vmatprep.subr.bf16.mxu1 %v3308_v7  ;;  %p3496_p1 = scmp.lt.s32.totalorder %s3494_s5, %s3488_s28 }
  0x4c   : > { %p3490_p13 = pnand %p3489_p9, %p5188_p11 }
  0x4d   : > { %862 = vmatpush1.bf16.msra.mxu0 %v3310_v8  ;;  %p3497_p3 = por %p3496_p1, %p3495_p12 }
  0x4e   : > { %3115 = vmatpush1.bf16.msra.mxu1 %v3310_v8  ;;  %863 = vmatprep.subr.bf16.mxu0 %v3311_v9  ;;  %p3491_p10 = pneg %p3490_p13 }
  0x4f   : > { %3110 = vmatprep.subr.bf16.mxu1 %v3311_v9 }
  0x50   : > { %p3498_p5 = pnand %p3497_p3, %p3491_p10 }
  0x51   : > { %864 = vmatpush1.bf16.msra.mxu0 %v3313_v10 }
  0x52   : > { %3116 = vmatpush1.bf16.msra.mxu1 %v3313_v10  ;;  %865 = vmatprep.subr.bf16.mxu0 %v3314_v11 }
  0x53   : > { %3111 = vmatprep.subr.bf16.mxu1 %v3314_v11 }
  0x55   : > { %866 = vmatpush1.bf16.msra.mxu0 %v3316_v12 }
  0x56   : > { %3117 = vmatpush1.bf16.msra.mxu1 %v3316_v12  ;;  %3042 = vmatprep.subr.bf16.mxu0 %v3576_v16 }
  0x58   : > { %2981 = vmatmul.mubr.msk.bf16.vlgmr.msra.gmra.mrb[0].mxu0 %vm815_vm0, %v3744_v13 }
  0x59   : > { %2988 = vmatmul.mubr.msk.bf16.vlgmr.msra.gmra.mrb[0].mxu1 %vm815_vm0, %v3750_v15  ;;  %3043 = vmatpush3.bf16.msra.mxu0 %v3318_v14 }
  0x5a   : > { %897 = vmatprep.mubr.bf16.mxu0 %v5043_v0  ;;  %3044 = vmatprep.subr.bf16.mxu0 %v3576_v16 }
  0x5b   : > { %967 = vmatprep.mubr.bf16.mxu1 %v5043_v0 }
  0x5d   : > { %3045 = vmatpush3.bf16.msra.mxu0 %v3320_v17 }
  0x5e   : > { %3046 = vmatprep.subr.bf16.mxu0 %v3576_v16 }
  0x60   : > { %2982 = vmatmul.mubr.msk.bf16.gmra.mrb[4].mxu0 %vm815_vm0, %v3764_v18 }
  0x61   : > { %2989 = vmatmul.mubr.msk.bf16.gmra.mrb[4].mxu1 %vm815_vm0, %v3771_v20  ;;  %907 = vmatprep.mubr.bf16.mxu0 %v5043_v0 }
  0x62   : > { %3047 = vmatpush3.bf16.msra.mxu0 %v3322_v19  ;;  %977 = vmatprep.mubr.bf16.mxu1 %v5043_v0 }
  0x63   : > { %3048 = vmatprep.subr.bf16.mxu0 %v3576_v16 }
  0x66   : > { %3049 = vmatpush3.bf16.msra.mxu0 %v3324_v21 }
  0x67   : > { %3050 = vmatprep.subr.bf16.mxu0 %v3576_v16 }
  0x68   : > { %2983 = vmatmul.mubr.msk.bf16.gmra.mrb[8].mxu0 %vm815_vm0, %v3784_v22 }
  0x69   : > { %2990 = vmatmul.mubr.msk.bf16.gmra.mrb[8].mxu1 %vm815_vm0, %v3791_v24  ;;  %917 = vmatprep.mubr.bf16.mxu0 %v5043_v0 }
  0x6a   : > { %3051 = vmatpush3.bf16.msra.mxu0 %v3326_v23  ;;  %987 = vmatprep.mubr.bf16.mxu1 %v5043_v0 }
  0x6b   : > { %3052 = vmatprep.subr.bf16.mxu0 %v3576_v16 }
  0x6e   : > { %3053 = vmatpush3.bf16.msra.mxu0 %v3329_v25 }
  0x70   : > { %2984 = vmatmul.mubr.msk.bf16.gmra.mrb[12].mxu0 %vm815_vm0, %v3804_v26 }
  0x71   : > { %2991 = vmatmul.mubr.msk.bf16.gmra.mrb[12].mxu1 %vm815_vm0, %v3809_v27  ;;  %927 = vmatprep.mubr.bf16.mxu0 %v5043_v0 }
  0x72   : > { %997 = vmatprep.mubr.bf16.mxu1 %v5043_v0 }
  0x78   : > { %2985 = vmatmul.mubr.msk.bf16.gmra.mrb[16].mxu0 %vm815_vm0, %v3820_v28 }
  0x79   : > { %2992 = vmatmul.mubr.msk.bf16.gmra.mrb[16].mxu1 %vm815_vm0, %v3825_v29  ;;  %937 = vmatprep.mubr.bf16.mxu0 %v5043_v0 }
  0x7a   : > { %1007 = vmatprep.mubr.bf16.mxu1 %v5043_v0 }
  0x80   : > { %2986 = vmatmul.mubr.msk.bf16.gmra.mrb[20].mxu0 %vm815_vm0, %v3836_v30 }
  0x81   : > { %2993 = vmatmul.mubr.msk.bf16.gmra.mrb[20].mxu1 %vm815_vm0, %v3841_v31  ;;  %947 = vmatprep.mubr.bf16.mxu0 %v5043_v0 }
  0x82   : > { %1050 = vmatprep.mubr.bf16.mxu1 %v5043_v0 }
  0x88   : > { %2987 = vmatmul.mubr.msk.bf16.gmra.mrb[24].mxu0 %vm815_vm0, %v3852_v32 }
  0x89   : > { %3054 = vmatprep.mubr.msk.bf16.mxu0 %vm3577_vm1, %v3576_v16 }
  0x90   : > { %3055 = vmatmul.mubr.msk.bf16.vlgmr.msra.gmra.mrb[28].mxu0 %vm815_vm0, %v3744_v13 }
  0x91   : > { %3058 = vmatprep.mubr.msk.bf16.mxu0 %vm3577_vm1, %v3576_v16 }
  0x98   : > { %3059 = vmatmul.mubr.msk.bf16.gmra.mrb[32].mxu0 %vm815_vm0, %v3764_v18 }
  0x99   : > { %3062 = vmatprep.mubr.msk.bf16.mxu0 %vm3577_vm1, %v3576_v16 }
  0xa0   : > { %3063 = vmatmul.mubr.msk.bf16.gmra.mrb[36].mxu0 %vm815_vm0, %v3784_v22 }
  0xa1   : > { %3066 = vmatprep.mubr.msk.bf16.mxu0 %vm3577_vm1, %v3576_v16 }
  0xa8   : > { %3067 = vmatmul.mubr.msk.bf16.gmra.mrb[40].mxu0 %vm815_vm0, %v3804_v26 }
  0xa9   : > { %3070 = vmatprep.mubr.msk.bf16.mxu0 %vm3577_vm1, %v3576_v16 }
  0xb0   : > { %3071 = vmatmul.mubr.msk.bf16.gmra.mrb[44].mxu0 %vm815_vm0, %v3820_v28 }
  0xb1   : > { %3074 = vmatprep.mubr.msk.bf16.mxu0 %vm3577_vm1, %v3576_v16 }
  0xb8   : > { %3075 = vmatmul.mubr.msk.bf16.gmra.mrb[48].mxu0 %vm815_vm0, %v3836_v30 }
  0xb9   : > { %3078 = vmatprep.mubr.msk.bf16.mxu0 %vm3577_vm1, %v3576_v16 }
  0xc0   : > { %3079 = vmatmul.mubr.msk.bf16.gmra.mrb[52].mxu0 %vm815_vm0, %v3852_v32 }
  0xc1   : > { %3082 = vmatprep.mubr.msk.bf16.mxu0 %vm3577_vm1, %v3576_v16 }
  0xc8   : > { %3083 = vmatmul.mubr.msk.bf16.gmra.mrb[56].mxu0 %vm815_vm0, %v3750_v15 }
  0xc9   : > { %3086 = vmatprep.mubr.msk.bf16.mxu0 %vm3577_vm1, %v3576_v16 }
  0xd0   : > { %3087 = vmatmul.mubr.msk.bf16.gmra.mrb[60].mxu0 %vm815_vm0, %v3771_v20 }
  0xd1   : > { %3090 = vmatprep.mubr.msk.bf16.mxu0 %vm3577_vm1, %v3576_v16 }
  0xd8   : > { %3091 = vmatmul.mubr.msk.bf16.gmra.mrb[64].mxu0 %vm815_vm0, %v3791_v24 }
  0xd9   : > { %3094 = vmatprep.mubr.msk.bf16.mxu0 %vm3577_vm1, %v3576_v16 }
  0xe0   : > { %3095 = vmatmul.mubr.msk.bf16.gmra.mrb[68].mxu0 %vm815_vm0, %v3809_v27 }
  0xe1   : > { %3098 = vmatprep.mubr.msk.bf16.mxu0 %vm3577_vm1, %v3576_v16 }
  0xe8   : > { %3099 = vmatmul.mubr.msk.bf16.gmra.mrb[72].mxu0 %vm815_vm0, %v3825_v29 }
  0xe9   : > { %3102 = vmatprep.mubr.msk.bf16.mxu0 %vm3577_vm1, %v3576_v16 }
  0xf0   : > { %3103 = vmatmul.mubr.msk.bf16.gmra.mrb[76].mxu0 %vm815_vm0, %v3841_v31 }
 0x12b   : > { %v3908_v33 = vpop.f32.mrb[0].mxu0 }
 0x12c   : > { %v3910_v34 = vpop.f32.mrb[1].mxu0 }
 0x12d   : > { %v3912_v35 = vpop.f32.mrb[2].mxu0 }
 0x12e   : > { %v3914_v36 = vpop.f32.mrb[3].mxu0 }
 0x133   : > { %v3916_v37 = vpop.f32.mrb[4].mxu0 }
 0x134   : > { %v3918_v38 = vpop.f32.mrb[5].mxu0 }
 0x135   : > { %v3920_v39 = vpop.f32.mrb[6].mxu0 }
 0x136   : > { %v3922_v40 = vpop.f32.mrb[7].mxu0 }
 0x13b   : > { %v3924_v41 = vpop.f32.mrb[8].mxu0 }
 0x13c   : > { %v3926_v42 = vpop.f32.mrb[9].mxu0 }
 0x13d   : > { %v3928_v43 = vpop.f32.mrb[10].mxu0 }
 0x13e   : > { %v3930_v44 = vpop.f32.mrb[11].mxu0 }
 0x143   : > { %v3932_v45 = vpop.f32.mrb[12].mxu0 }
 0x144   : > { %5060 = vst [vmem:[#allocation9_spill] sm:$0xff] %v3932_v45  ;;  %v3934_v46 = vpop.f32.mrb[13].mxu0 }
 0x145   : > { %5061 = vst [vmem:[#allocation10_spill] sm:$0xff] %v3934_v46  ;;  %v3936_v47 = vpop.f32.mrb[14].mxu0 }
 0x146   : > { %5062 = vst [vmem:[#allocation11_spill] sm:$0xff] %v3936_v47  ;;  %v3938_v48 = vpop.f32.mrb[15].mxu0 }
 0x147   : > { %5063 = vst [vmem:[#allocation12_spill] sm:$0xff] %v3938_v48 }
 0x14b   : > { %v3940_v49 = vpop.f32.mrb[16].mxu0 }
 0x14c   : > { %5064 = vst [vmem:[#allocation13_spill] sm:$0xff] %v3940_v49  ;;  %v3942_v50 = vpop.f32.mrb[17].mxu0  ;;  %v3353_v49 = vld [vmem:[%s3720_s21 + $0xd4] ss:$20 sps:$4 sm:$0xff]  }
 0x14d   : > { %5065 = vst [vmem:[#allocation14_spill] sm:$0xff] %v3942_v50  ;;  %v3944_v51 = vpop.f32.mrb[18].mxu0  ;;  %v3348_v50 = vld [vmem:[%s3720_s21 + $0xa8] ss:$20 sps:$4 sm:$0xff]  }
 0x14e   : > { %5066 = vst [vmem:[#allocation15_spill] sm:$0xff] %v3944_v51  ;;  %v3946_v52 = vpop.f32.mrb[19].mxu0 }
 0x14f   : > { %5067 = vst [vmem:[#allocation16_spill] sm:$0xff] %v3946_v52  ;;  %v3345_v52 = vld [vmem:[%s3720_s21 + $0x80] ss:$20 sps:$4 sm:$0xff]  }
 0x153   : > { %v3948_v53 = vpop.f32.mrb[20].mxu0 }
 0x154   : > { %5068 = vst [vmem:[#allocation17_spill] sm:$0xff] %v3948_v53  ;;  %v3950_v54 = vpop.f32.mrb[21].mxu0 }
 0x155   : > { %5069 = vst [vmem:[#allocation18_spill] sm:$0xff] %v3950_v54  ;;  %v3952_v55 = vpop.f32.mrb[22].mxu0  ;;  %v3339_v54 = vld [vmem:[%s3720_s21 + $0x30] ss:$20 sps:$4 sm:$0xff]  }
 0x156   : > { %5070 = vst [vmem:[#allocation19_spill] sm:$0xff] %v3952_v55  ;;  %v3954_v56 = vpop.f32.mrb[23].mxu0 }
 0x157   : > { %5071 = vst [vmem:[#allocation20_spill] sm:$0xff] %v3954_v56 }
 0x15b   : > { %v3956_v57 = vpop.f32.mrb[24].mxu0 }
 0x15c   : > { %5072 = vst [vmem:[#allocation21_spill] sm:$0xff] %v3956_v57  ;;  %v3958_v58 = vpop.f32.mrb[25].mxu0  ;;  %v3338_v57 = vld [vmem:[%s3720_s21 + $0xc] ss:$20 sps:$4 sm:$0xff]  }
 0x15d   : > { %5073 = vst [vmem:[#allocation22_spill] sm:$0xff] %v3958_v58  ;;  %v3960_v59 = vpop.f32.mrb[26].mxu0  ;;  %1018 = vmatprep.subr.bf16.mxu1 %v3338_v57  ;;  %v3342_v57 = vld [vmem:[%s3720_s21 + $0x58] ss:$20 sps:$4 sm:$0xff]  }
 0x15e   : > { %5074 = vst [vmem:[#allocation23_spill] sm:$0xff] %v3960_v59  ;;  %v3962_v60 = vpop.f32.mrb[27].mxu0 }
 0x15f   : > { %5075 = vst [vmem:[#allocation24_spill] sm:$0xff] %v3962_v60 }
 0x163   : > { %v3964_v61 = vpop.f32.mrb[28].mxu0 }
 0x164   : > { %v3056_v62 = vpop.f32.mrb[29].mxu0  ;;  %v1712_v63 = vsel %vm1711_vm2, %v3964_v61, -inf }
 0x165   : > { %1713 = vmax.xlane.f32.xlu0 %v1712_v63  ;;  %v3968_v1 = vpop.f32.mrb[30].mxu0 }
 0x166   : > { %v3057_v2 = vpop.f32.mrb[31].mxu0  ;;  %v1715_v3 = vsel %vm1711_vm2, %v3968_v1, -inf }
 0x169   : > { %1716 = vmax.xlane.f32.xlu0 %v1715_v3 }
 0x16b   : > { %v3972_v4 = vpop.f32.mrb[32].mxu0 }
 0x16c   : > { %v1718_v5 = vsel %vm1711_vm2, %v3972_v4, -inf  ;;  %v3060_v6 = vpop.f32.mrb[33].mxu0 }
 0x16d   : > { %1719 = vmax.xlane.f32.xlu1 %v1718_v5  ;;  %v3976_v7 = vpop.f32.mrb[34].mxu0 }
 0x16e   : > { %v1721_v8 = vsel %vm1711_vm2, %v3976_v7, -inf  ;;  %v3061_v9 = vpop.f32.mrb[35].mxu0 }
 0x171   : > { %1722 = vmax.xlane.f32.xlu1 %v1721_v8 }
 0x173   : > { %v3980_v10 = vpop.f32.mrb[36].mxu0 }
 0x174   : > { %v3064_v11 = vpop.f32.mrb[37].mxu0  ;;  %v1724_v12 = vsel %vm1711_vm2, %v3980_v10, -inf }
 0x175   : > { %1725 = vmax.xlane.f32.xlu0 %v1724_v12  ;;  %v3984_v14 = vpop.f32.mrb[38].mxu0 }
 0x176   : > { %v1727_v16 = vsel %vm1711_vm2, %v3984_v14, -inf  ;;  %v3065_v17 = vpop.f32.mrb[39].mxu0 }
 0x177   : > { %1728 = vmax.xlane.f32.xlu1 %v1727_v16 }
 0x17b   : > { %v3988_v19 = vpop.f32.mrb[40].mxu0 }
 0x17c   : > { %v3068_v21 = vpop.f32.mrb[41].mxu0  ;;  %v1730_v23 = vsel %vm1711_vm2, %v3988_v19, -inf }
 0x17d   : > { %1731 = vmax.xlane.f32.xlu0 %v1730_v23  ;;  %v3992_v25 = vpop.f32.mrb[42].mxu0 }
 0x17e   : > { %v1733_v62 = vsel %vm1711_vm2, %v3992_v25, -inf  ;;  %v3069_v63 = vpop.f32.mrb[43].mxu0 }
 0x17f   : > { %1734 = vmax.xlane.f32.xlu1 %v1733_v62 }
 0x183   : > { %v3996_v2 = vpop.f32.mrb[44].mxu0 }
 0x184   : > { %v3072_v3 = vpop.f32.mrb[45].mxu0  ;;  %v1736_v5 = vsel %vm1711_vm2, %v3996_v2, -inf }
 0x185   : > { %1737 = vmax.xlane.f32.xlu0 %v1736_v5  ;;  %v4000_v6 = vpop.f32.mrb[46].mxu0 }
 0x186   : > { %v1739_v8 = vsel %vm1711_vm2, %v4000_v6, -inf  ;;  %v3073_v9 = vpop.f32.mrb[47].mxu0 }
 0x187   : > { %1740 = vmax.xlane.f32.xlu1 %v1739_v8 }
 0x18b   : > { %v4004_v11 = vpop.f32.mrb[48].mxu0 }
 0x18c   : > { %v3076_v12 = vpop.f32.mrb[49].mxu0  ;;  %v1742_v16 = vsel %vm1711_vm2, %v4004_v11, -inf }
 0x18d   : > { %1743 = vmax.xlane.f32.xlu0 %v1742_v16  ;;  %v4008_v17 = vpop.f32.mrb[50].mxu0 }
 0x18e   : > { %v1745_v21 = vsel %vm1711_vm2, %v4008_v17, -inf  ;;  %v3077_v23 = vpop.f32.mrb[51].mxu0 }
 0x18f   : > { %1746 = vmax.xlane.f32.xlu1 %v1745_v21 }
 0x193   : > { %v4012_v62 = vpop.f32.mrb[52].mxu0 }
 0x194   : > { %v3080_v63 = vpop.f32.mrb[53].mxu0  ;;  %v1748_v3 = vsel %vm1711_vm2, %v4012_v62, -inf }
 0x195   : > { %1749 = vmax.xlane.f32.xlu0 %v1748_v3  ;;  %v4016_v5 = vpop.f32.mrb[54].mxu0 }
 0x196   : > { %v1751_v8 = vsel %vm1711_vm2, %v4016_v5, -inf  ;;  %v3081_v9 = vpop.f32.mrb[55].mxu0 }
 0x197   : > { %1752 = vmax.xlane.f32.xlu1 %v1751_v8 }
 0x19b   : > { %v4020_v12 = vpop.f32.mrb[56].mxu0 }
 0x19c   : > { %v3084_v16 = vpop.f32.mrb[57].mxu0  ;;  %v1754_v21 = vsel %vm1711_vm2, %v4020_v12, -inf }
 0x19d   : > { %1755 = vmax.xlane.f32.xlu0 %v1754_v21  ;;  %v4024_v23 = vpop.f32.mrb[58].mxu0 }
 0x19e   : > { %v1757_v63 = vsel %vm1711_vm2, %v4024_v23, -inf  ;;  %v3085_v3 = vpop.f32.mrb[59].mxu0 }
 0x19f   : > { %1758 = vmax.xlane.f32.xlu1 %v1757_v63 }
 0x1a3   : > { %v4028_v0 = vpop.f32.mrb[60].mxu0 }
 0x1a4   : > { %v3088_v60 = vpop.f32.mrb[61].mxu0  ;;  %v1760_v8 = vsel %vm1711_vm2, %v4028_v0, -inf }
 0x1a5   : > { %1761 = vmax.xlane.f32.xlu0 %v1760_v8  ;;  %v4032_v9 = vpop.f32.mrb[62].mxu0 }
 0x1a6   : > { %v1763_v16 = vsel %vm1711_vm2, %v4032_v9, -inf  ;;  %v3089_v21 = vpop.f32.mrb[63].mxu0 }
 0x1a7   : > { %1764 = vmax.xlane.f32.xlu1 %v1763_v16  ;;  %v3336_v16 = vld [vmem:[%s3720_s21 + $0x8] ss:$20 sps:$4 sm:$0xff]  }
 0x1a8   : > { %1019 = vmatpush1.bf16.msra.mxu1 %v3336_v16 }
 0x1ab   : > { %v4036_v59 = vpop.f32.mrb[64].mxu0 }
 0x1ac   : > { %v3092_v3 = vpop.f32.mrb[65].mxu0  ;;  %v1766_v63 = vsel %vm1711_vm2, %v4036_v59, -inf }
 0x1ad   : > { %1767 = vmax.xlane.f32.xlu0 %v1766_v63  ;;  %v4040_v60 = vpop.f32.mrb[66].mxu0 }
 0x1ae   : > { %v1769_v8 = vsel %vm1711_vm2, %v4040_v60, -inf  ;;  %v3093_v58 = vpop.f32.mrb[67].mxu0 }
 0x1af   : > { %1770 = vmax.xlane.f32.xlu1 %v1769_v8  ;;  %v3341_v8 = vld [vmem:[%s3720_s21 + $0x34] ss:$20 sps:$4 sm:$0xff]  }
 0x1b0   : > { %1020 = vmatprep.subr.bf16.mxu1 %v3341_v8 }
 0x1b1   : > { %1021 = vmatpush1.bf16.msra.mxu1 %v3339_v54  ;;  %v3347_v54 = vld [vmem:[%s3720_s21 + $0x84] ss:$20 sps:$4 sm:$0xff]  }
 0x1b3   : > { %v4045_v21 = vpop.f32.mrb[68].mxu0 }
 0x1b4   : > { %v3096_v3 = vpop.f32.mrb[69].mxu0  ;;  %v1772_v56 = vsel %vm1711_vm2, %v4045_v21, -inf }
 0x1b5   : > { %1773 = vmax.xlane.f32.xlu0 %v1772_v56  ;;  %v4050_v63 = vpop.f32.mrb[70].mxu0  ;;  %v3344_v3 = vld [vmem:[%s3720_s21 + $0x5c] ss:$20 sps:$4 sm:$0xff]  }
 0x1b6   : > { %v1775_v55 = vsel %vm1711_vm2, %v4050_v63, -inf  ;;  %v3097_v58 = vpop.f32.mrb[71].mxu0  ;;  %1022 = vmatprep.subr.bf16.mxu1 %v3344_v3 }
 0x1b7   : > { %1776 = vmax.xlane.f32.xlu1 %v1775_v55  ;;  %1023 = vmatpush1.bf16.msra.mxu1 %v3342_v57 }
 0x1b8   : > { %1024 = vmatprep.subr.bf16.mxu1 %v3347_v54  ;;  %v5076_v54 = vmov 0  }
 0x1bb   : > { %v4057_v53 = vpop.f32.mrb[72].mxu0  ;;  %1025 = vmatpush1.bf16.msra.mxu1 %v3345_v52  ;;  %v3351_v52 = vld [vmem:[%s3720_s21 + $0xd0] ss:$20 sps:$4 sm:$0xff]  }
 0x1bc   : > { %v3100_v56 = vpop.f32.mrb[73].mxu0  ;;  %v1778_v16 = vsel %vm1711_vm2, %v4057_v53, -inf }
 0x1bd   : > { %1779 = vmax.xlane.f32.xlu0 %v1778_v16  ;;  %v4062_v58 = vpop.f32.mrb[74].mxu0  ;;  %v3350_v56 = vld [vmem:[%s3720_s21 + $0xac] ss:$20 sps:$4 sm:$0xff]   ;;  %s263_s21 = scalar_select %p262_p8, %s3562_s15, 2 }
 0x1be   : > { %v1781_v55 = vsel %vm1711_vm2, %v4062_v58, -inf  ;;  %v3101_v8 = vpop.f32.mrb[75].mxu0  ;;  %1026 = vmatprep.subr.bf16.mxu1 %v3350_v56  ;;  %s2796_s15 = scalar_lea.sflag [#allocation5], %s3716_s11 }
 0x1bf   : > { %1782 = vmax.xlane.f32.xlu1 %v1781_v55  ;;  %1027 = vmatpush1.bf16.msra.mxu1 %v3348_v50  ;;  %s2937_s6 = sshll.u32 %s263_s21, 2 }
 0x1c0   : > { %1028 = vmatprep.subr.bf16.mxu1 %v3353_v49  ;;  %s265_s19 = scalar_lea.vmem %s5040_s2, %s2937_s6 }
 0x1c3   : > { %v4069_v51 = vpop.f32.mrb[76].mxu0  ;;  %1029 = vmatpush1.bf16.msra.mxu1 %v3351_v52 }
 0x1c4   : > { %v3104_v3 = vpop.f32.mrb[77].mxu0  ;;  %v1784_v16 = vsel %vm1711_vm2, %v4069_v51, -inf }
 0x1c5   : > { %1785 = vmax.xlane.f32.xlu0 %v1784_v16  ;;  %v4074_v57 = vpop.f32.mrb[78].mxu0 }
 0x1c6   : > { %v1787_v55 = vsel %vm1711_vm2, %v4074_v57, -inf  ;;  %v3105_v8 = vpop.f32.mrb[79].mxu0  ;;  %2994 = vmatmul.mubr.msk.bf16.vlgmr.msra.gmra.mrb[24].mxu1 %vm815_vm0, %v3744_v13 }
 0x1c7   : > { %1788 = vmax.xlane.f32.xlu1 %v1787_v55  ;;  %1060 = vmatprep.mubr.bf16.mxu1 %v5076_v54 }
 0x1ce   : > { %2995 = vmatmul.mubr.msk.bf16.gmra.mrb[28].mxu1 %vm815_vm0, %v3764_v18 }
 0x1cf   : > { %1070 = vmatprep.mubr.bf16.mxu1 %v5076_v54 }
 0x1d6   : > { %2996 = vmatmul.mubr.msk.bf16.gmra.mrb[32].mxu1 %vm815_vm0, %v3784_v22 }
 0x1d7   : > { %1080 = vmatprep.mubr.bf16.mxu1 %v5076_v54 }
 0x1de   : > { %2997 = vmatmul.mubr.msk.bf16.gmra.mrb[36].mxu1 %vm815_vm0, %v3804_v26 }
 0x1df   : > { %1090 = vmatprep.mubr.bf16.mxu1 %v5076_v54 }
 0x1e6   : > { %2998 = vmatmul.mubr.msk.bf16.gmra.mrb[40].mxu1 %vm815_vm0, %v3820_v28 }
 0x1e7   : > { %1100 = vmatprep.mubr.bf16.mxu1 %v5076_v54 }
 0x1ee   : > { %2999 = vmatmul.mubr.msk.bf16.gmra.mrb[44].mxu1 %vm815_vm0, %v3836_v30 }
 0x1ef   : > { %1110 = vmatprep.mubr.bf16.mxu1 %v5076_v54 }
 0x1f2   : > { %v1714_v13 = vpop.xlane.xlu0 %1713 }
 0x1f3   : > { %v1790_v18 = vsub.f32 %v3964_v61, %v1714_v13 }
 0x1f5   : > { %v1816_v49 = vmul.f32 1.442695, %v1790_v18 }
 0x1f6   : > { %v1717_v22 = vpop.xlane.xlu0 %1716  ;;  %3000 = vmatmul.mubr.msk.bf16.gmra.mrb[48].mxu1 %vm815_vm0, %v3852_v32 }
 0x1f7   : > { %3354 = vpow2.f32 %v1816_v49  ;;  %v1791_v26 = vsub.f32 %v3968_v1, %v1717_v22  ;;  %1120 = vmatprep.mubr.bf16.mxu1 %v5076_v54 }
 0x1f9   : > { %v1818_v50 = vmul.f32 1.442695, %v1791_v26 }
 0x1fa   : > { %v1720_v56 = vpop.xlane.xlu1 %1719 }
 0x1fb   : > { %3356 = vpow2.f32 %v1818_v50  ;;  %v1792_v28 = vsub.f32 %v3972_v4, %v1720_v56 }
 0x1fd   : > { %v1820_v3 = vmul.f32 1.442695, %v1792_v28 }
 0x1fe   : > { %v1723_v61 = vpop.xlane.xlu1 %1722  ;;  %3001 = vmatmul.mubr.msk.bf16.gmra.mrb[52].mxu1 %vm815_vm0, %v3750_v15 }
 0x1ff   : > { %3358 = vpow2.f32 %v1820_v3  ;;  %v1793_v30 = vsub.f32 %v3976_v7, %v1723_v61  ;;  %1130 = vmatprep.mubr.bf16.mxu1 %v5076_v54 }
 0x201   : > { %v4105_v16 = vpop.eup %3354  ;;  %v1822_v55 = vmul.f32 1.442695, %v1793_v30 }
 0x202   : > { %v1726_v8 = vpop.xlane.xlu0 %1725  ;;  %v1868_v1 = vsel %vm1711_vm2, %v4105_v16, 0.0 }
 0x203   : > { %3360 = vpow2.f32 %v1822_v55  ;;  %v1794_v4 = vsub.f32 %v3980_v10, %v1726_v8  ;;  %1869 = vadd.xlane.f32.xlu0 %v1868_v1 }
 0x204   : > { %v1729_v52 = vpop.xlane.xlu1 %1728 }
 0x205   : > { %v4112_v32 = vpop.eup %3356  ;;  %v1824_v13 = vmul.f32 1.442695, %v1794_v4  ;;  %v1795_v7 = vsub.f32 %v3984_v14, %v1729_v52 }
 0x206   : > { %v1871_v18 = vsel %vm1711_vm2, %v4112_v32, 0.0  ;;  %3002 = vmatmul.mubr.msk.bf16.gmra.mrb[56].mxu1 %vm815_vm0, %v3771_v20 }
 0x207   : > { %3362 = vpow2.f32 %v1824_v13  ;;  %v1826_v49 = vmul.f32 1.442695, %v1795_v7  ;;  %1872 = vadd.xlane.f32.xlu1 %v1871_v18  ;;  %1140 = vmatprep.mubr.bf16.mxu1 %v5076_v54 }
 0x209   : > { %v4118_v22 = vpop.eup %3358  ;;  %3364 = vpow2.f32 %v1826_v49 }
 0x20a   : > { %v1732_v10 = vpop.xlane.xlu0 %1731  ;;  %v1874_v15 = vsel %vm1711_vm2, %v4118_v22, 0.0 }
 0x20b   : > { %v1796_v26 = vsub.f32 %v3988_v19, %v1732_v10  ;;  %1875 = vadd.xlane.f32.xlu0 %v1874_v15 }
 0x20c   : > { %v1735_v50 = vpop.xlane.xlu1 %1734 }
 0x20d   : > { %v4125_v14 = vpop.eup %3360  ;;  %v1828_v56 = vmul.f32 1.442695, %v1796_v26  ;;  %v1797_v28 = vsub.f32 %v3992_v25, %v1735_v50  ;;  %v5045_v50 = vmov 1  }
 0x20e   : > { %v1877_v3 = vsel %vm1711_vm2, %v4125_v14, 0.0  ;;  %3003 = vmatmul.mubr.msk.bf16.gmra.mrb[60].mxu1 %vm815_vm0, %v3791_v24  ;;  %3196 = vset.pattern.permute.xlu1 %v5045_v50 }
 0x20f   : > { %3366 = vpow2.f32 %v1828_v56  ;;  %v1830_v61 = vmul.f32 1.442695, %v1797_v28  ;;  %1878 = vadd.xlane.f32.xlu1 %v1877_v3  ;;  %1150 = vmatprep.mubr.bf16.mxu1 %v5076_v54 }
 0x211   : > { %v4131_v30 = vpop.eup %3362  ;;  %3368 = vpow2.f32 %v1830_v61 }
 0x212   : > { %v1738_v19 = vpop.xlane.xlu0 %1737  ;;  %v1880_v20 = vsel %vm1711_vm2, %v4131_v30, 0.0 }
 0x213   : > { %v4135_v55 = vpop.eup %3364  ;;  %v1798_v8 = vsub.f32 %v3996_v2, %v1738_v19  ;;  %1881 = vadd.xlane.f32.xlu0 %v1880_v20 }
 0x214   : > { %v1741_v25 = vpop.xlane.xlu1 %1740  ;;  %v1883_v1 = vsel %vm1711_vm2, %v4135_v55, 0.0 }
 0x215   : > { %v1832_v4 = vmul.f32 1.442695, %v1798_v8  ;;  %v1799_v52 = vsub.f32 %v4000_v6, %v1741_v25  ;;  %1884 = vadd.xlane.f32.xlu1 %v1883_v1 }
 0x216   : > { %3004 = vmatmul.mubr.msk.bf16.gmra.mrb[64].mxu1 %vm815_vm0, %v3809_v27 }
 0x217   : > { %3370 = vpow2.f32 %v1832_v4  ;;  %v1834_v13 = vmul.f32 1.442695, %v1799_v52  ;;  %1160 = vmatprep.mubr.bf16.mxu1 %v5076_v54 }
 0x219   : > { %v4144_v7 = vpop.eup %3366  ;;  %3372 = vpow2.f32 %v1834_v13 }
 0x21a   : > { %v1744_v2 = vpop.xlane.xlu0 %1743  ;;  %v1886_v18 = vsel %vm1711_vm2, %v4144_v7, 0.0 }
 0x21b   : > { %v4148_v49 = vpop.eup %3368  ;;  %v1800_v10 = vsub.f32 %v4004_v11, %v1744_v2  ;;  %1887 = vadd.xlane.f32.xlu0 %v1886_v18 }
 0x21c   : > { %v1747_v24 = vpop.xlane.xlu1 %1746  ;;  %v1889_v6 = vsel %vm1711_vm2, %v4148_v49, 0.0 }
 0x21d   : > { %v1836_v15 = vmul.f32 1.442695, %v1800_v10  ;;  %v1801_v26 = vsub.f32 %v4008_v17, %v1747_v24  ;;  %1890 = vadd.xlane.f32.xlu1 %v1889_v6 }
 0x21e   : > { %3005 = vmatmul.mubr.msk.bf16.gmra.mrb[68].mxu1 %vm815_vm0, %v3825_v29 }
 0x21f   : > { %3374 = vpow2.f32 %v1836_v15  ;;  %v1838_v56 = vmul.f32 1.442695, %v1801_v26  ;;  %1170 = vmatprep.mubr.bf16.mxu1 %v5076_v54 }
 0x221   : > { %v4158_v11 = vpop.eup %3370  ;;  %3376 = vpow2.f32 %v1838_v56 }
 0x222   : > { %v1750_v28 = vpop.xlane.xlu0 %1749  ;;  %v1892_v3 = vsel %vm1711_vm2, %v4158_v11, 0.0 }
 0x223   : > { %v4162_v61 = vpop.eup %3372  ;;  %v1802_v27 = vsub.f32 %v4012_v62, %v1750_v28  ;;  %1893 = vadd.xlane.f32.xlu0 %v1892_v3 }
 0x224   : > { %v1753_v17 = vpop.xlane.xlu1 %1752  ;;  %v1895_v19 = vsel %vm1711_vm2, %v4162_v61, 0.0 }
 0x225   : > { %v1840_v20 = vmul.f32 1.442695, %v1802_v27  ;;  %v1803_v8 = vsub.f32 %v4016_v5, %v1753_v17  ;;  %1896 = vadd.xlane.f32.xlu1 %v1895_v19 }
 0x226   : > { %3006 = vmatmul.mubr.msk.bf16.gmra.mrb[72].mxu1 %vm815_vm0, %v3841_v31 }
 0x227   : > { %3378 = vpow2.f32 %v1840_v20  ;;  %v1842_v25 = vmul.f32 1.442695, %v1803_v8 }
 0x229   : > { %v4171_v1 = vpop.eup %3374  ;;  %3380 = vpow2.f32 %v1842_v25 }
 0x22a   : > { %v1756_v62 = vpop.xlane.xlu0 %1755  ;;  %v1898_v4 = vsel %vm1711_vm2, %v4171_v1, 0.0 }
 0x22b   : > { %v4175_v52 = vpop.eup %3376  ;;  %v1804_v13 = vsub.f32 %v4020_v12, %v1756_v62  ;;  %1899 = vadd.xlane.f32.xlu0 %v1898_v4 }
 0x22c   : > { %v1759_v29 = vpop.xlane.xlu1 %1758  ;;  %v1901_v5 = vsel %vm1711_vm2, %v4175_v52, 0.0 }
 0x22d   : > { %v1844_v2 = vmul.f32 1.442695, %v1804_v13  ;;  %v1805_v18 = vsub.f32 %v4024_v23, %v1759_v29  ;;  %1902 = vadd.xlane.f32.xlu1 %v1901_v5 }
 0x22f   : > { %3382 = vpow2.f32 %v1844_v2  ;;  %v1846_v10 = vmul.f32 1.442695, %v1805_v18 }
 0x231   : > { %v4183_v24 = vpop.eup %3378  ;;  %3384 = vpow2.f32 %v1846_v10 }
 0x232   : > { %v1762_v6 = vpop.xlane.xlu0 %1761  ;;  %v1904_v12 = vsel %vm1711_vm2, %v4183_v24, 0.0 }
 0x233   : > { %v4187_v15 = vpop.eup %3380  ;;  %v1806_v26 = vsub.f32 %v4028_v0, %v1762_v6  ;;  %1905 = vadd.xlane.f32.xlu0 %v1904_v12 }
 0x234   : > { %v1765_v56 = vpop.xlane.xlu1 %1764  ;;  %v1907_v31 = vsel %vm1711_vm2, %v4187_v15, 0.0 }
 0x235   : > { %v1848_v23 = vmul.f32 1.442695, %v1806_v26  ;;  %v1807_v28 = vsub.f32 %v4032_v9, %v1765_v56  ;;  %1908 = vadd.xlane.f32.xlu1 %v1907_v31 }
 0x237   : > { %3386 = vpow2.f32 %v1848_v23  ;;  %v1850_v3 = vmul.f32 1.442695, %v1807_v28 }
 0x239   : > { %v4193_v27 = vpop.eup %3382  ;;  %3388 = vpow2.f32 %v1850_v3 }
 0x23a   : > { %v1768_v17 = vpop.xlane.xlu0 %1767  ;;  %v1910_v19 = vsel %vm1711_vm2, %v4193_v27, 0.0 }
 0x23b   : > { %v4197_v20 = vpop.eup %3384  ;;  %v1808_v0 = vsub.f32 %v4036_v59, %v1768_v17  ;;  %1911 = vadd.xlane.f32.xlu0 %v1910_v19 }
 0x23c   : > { %v1771_v8 = vpop.xlane.xlu1 %1770  ;;  %v1913_v25 = vsel %vm1711_vm2, %v4197_v20, 0.0 }
 0x23d   : > { %v1852_v9 = vmul.f32 1.442695, %v1808_v0  ;;  %v1809_v62 = vsub.f32 %v4040_v60, %v1771_v8  ;;  %1914 = vadd.xlane.f32.xlu1 %v1913_v25 }
 0x23f   : > { %3390 = vpow2.f32 %v1852_v9  ;;  %v1854_v4 = vmul.f32 1.442695, %v1809_v62 }
 0x241   : > { %v4203_v13 = vpop.eup %3386  ;;  %3392 = vpow2.f32 %v1854_v4 }
 0x242   : > { %v1774_v29 = vpop.xlane.xlu0 %1773  ;;  %v1916_v5 = vsel %vm1711_vm2, %v4203_v13, 0.0 }
 0x243   : > { %v4207_v2 = vpop.eup %3388  ;;  %v1810_v59 = vsub.f32 %v4045_v21, %v1774_v29  ;;  %1917 = vadd.xlane.f32.xlu0 %v1916_v5 }
 0x244   : > { %v1777_v18 = vpop.xlane.xlu1 %1776  ;;  %v1919_v10 = vsel %vm1711_vm2, %v4207_v2, 0.0 }
 0x245   : > { %v1856_v60 = vmul.f32 1.442695, %v1810_v59  ;;  %v1811_v6 = vsub.f32 %v4050_v63, %v1777_v18  ;;  %1920 = vadd.xlane.f32.xlu1 %v1919_v10 }
 0x247   : > { %3394 = vpow2.f32 %v1856_v60  ;;  %v1858_v12 = vmul.f32 1.442695, %v1811_v6 }
 0x249   : > { %v4213_v26 = vpop.eup %3390  ;;  %3396 = vpow2.f32 %v1858_v12 }
 0x24a   : > { %v1780_v56 = vpop.xlane.xlu0 %1779  ;;  %v1922_v31 = vsel %vm1711_vm2, %v4213_v26, 0.0 }
 0x24b   : > { %v4217_v23 = vpop.eup %3392  ;;  %v1812_v21 = vsub.f32 %v4057_v53, %v1780_v56  ;;  %1923 = vadd.xlane.f32.xlu0 %v1922_v31  ;;  %v4249_v56 = vpop.f32.mrb[0].mxu1 }
 0x24c   : > { %v1783_v28 = vpop.xlane.xlu1 %1782  ;;  %v1925_v3 = vsel %vm1711_vm2, %v4217_v23, 0.0  ;;  %5080 = vst [vmem:[#allocation28_spill] sm:$0xff] %v4249_v56  ;;  %v4251_v31 = vpop.f32.mrb[1].mxu1 }
 0x24d   : > { %v1860_v63 = vmul.f32 1.442695, %v1812_v21  ;;  %v1813_v17 = vsub.f32 %v4062_v58, %v1783_v28  ;;  %1926 = vadd.xlane.f32.xlu1 %v1925_v3  ;;  %5081 = vst [vmem:[#allocation29_spill] sm:$0xff] %v4251_v31  ;;  %v4253_v21 = vpop.f32.mrb[2].mxu1 }
 0x24e   : > { %5082 = vst [vmem:[#allocation30_spill] sm:$0xff] %v4253_v21  ;;  %v4255_v28 = vpop.f32.mrb[3].mxu1 }
 0x24f   : > { %3398 = vpow2.f32 %v1860_v63  ;;  %v1862_v19 = vmul.f32 1.442695, %v1813_v17  ;;  %5083 = vst [vmem:[#allocation31_spill] sm:$0xff] %v4255_v28  ;;  %v4257_v3 = vpop.f32.mrb[4].mxu1 }
 0x250   : > { %5084 = vst [vmem:[#allocation32_spill] sm:$0xff] %v4257_v3  ;;  %v4259_v63 = vpop.f32.mrb[5].mxu1 }
 0x251   : > { %v4223_v0 = vpop.eup %3394  ;;  %3400 = vpow2.f32 %v1862_v19  ;;  %5085 = vst [vmem:[#allocation33_spill] sm:$0xff] %v4259_v63  ;;  %v4261_v17 = vpop.f32.mrb[6].mxu1 }
 0x252   : > { %v1786_v8 = vpop.xlane.xlu0 %1785  ;;  %v1928_v25 = vsel %vm1711_vm2, %v4223_v0, 0.0  ;;  %5086 = vst [vmem:[#allocation34_spill] sm:$0xff] %v4261_v17  ;;  %v4263_v19 = vpop.f32.mrb[7].mxu1 }
 0x253   : > { %v4227_v9 = vpop.eup %3396  ;;  %v1814_v53 = vsub.f32 %v4069_v51, %v1786_v8  ;;  %1929 = vadd.xlane.f32.xlu0 %v1928_v25  ;;  %5087 = vst [vmem:[#allocation35_spill] sm:$0xff] %v4263_v19  ;;  %v4265_v8 = vpop.f32.mrb[8].mxu1 }
 0x254   : > { %v1789_v62 = vpop.xlane.xlu1 %1788  ;;  %v1931_v4 = vsel %vm1711_vm2, %v4227_v9, 0.0  ;;  %5088 = vst [vmem:[#allocation36_spill] sm:$0xff] %v4265_v8  ;;  %v4267_v25 = vpop.f32.mrb[9].mxu1 }
 0x255   : > { %v1864_v58 = vmul.f32 1.442695, %v1814_v53  ;;  %v1815_v29 = vsub.f32 %v4074_v57, %v1789_v62  ;;  %1932 = vadd.xlane.f32.xlu1 %v1931_v4  ;;  %5089 = vst [vmem:[#allocation37_spill] sm:$0xff] %v4267_v25  ;;  %v4269_v62 = vpop.f32.mrb[10].mxu1 }
 0x256   : > { %5090 = vst [vmem:[#allocation38_spill] sm:$0xff] %v4269_v62  ;;  %v4271_v4 = vpop.f32.mrb[11].mxu1 }
 0x257   : > { %3402 = vpow2.f32 %v1864_v58  ;;  %v1866_v5 = vmul.f32 1.442695, %v1815_v29  ;;  %5091 = vst [vmem:[#allocation39_spill] sm:$0xff] %v4271_v4  ;;  %v4273_v58 = vpop.f32.mrb[12].mxu1 }
 0x258   : > { %5092 = vst [vmem:[#allocation40_spill] sm:$0xff] %v4273_v58  ;;  %v4275_v29 = vpop.f32.mrb[13].mxu1 }
 0x259   : > { %v4233_v59 = vpop.eup %3398  ;;  %3404 = vpow2.f32 %v1866_v5  ;;  %5093 = vst [vmem:[#allocation41_spill] sm:$0xff] %v4275_v29  ;;  %v4277_v5 = vpop.f32.mrb[14].mxu1 }
 0x25a   : > { %v1934_v18 = vsel %vm1711_vm2, %v4233_v59, 0.0  ;;  %5094 = vst [vmem:[#allocation42_spill] sm:$0xff] %v4277_v5 }
 0x25b   : > { %v4237_v10 = vpop.eup %3400  ;;  %1935 = vadd.xlane.f32.xlu0 %v1934_v18  ;;  %v4279_v18 = vpop.f32.mrb[15].mxu1 }
 0x25c   : > { %5077 = vst [vmem:[#allocation25_spill] sm:$0xff] %v4237_v10  ;;  %v1937_v51 = vsel %vm1711_vm2, %v4237_v10, 0.0  ;;  %5095 = vst [vmem:[#allocation43_spill] sm:$0xff] %v4279_v18 }
 0x25d   : > { %1938 = vadd.xlane.f32.xlu1 %v1937_v51 }
 0x261   : > { %v4241_v60 = vpop.eup %3402 }
 0x262   : > { %5078 = vst [vmem:[#allocation26_spill] sm:$0xff] %v4241_v60  ;;  %v1940_v57 = vsel %vm1711_vm2, %v4241_v60, 0.0 }
 0x263   : > { %v4245_v6 = vpop.eup %3404  ;;  %1941 = vadd.xlane.f32.xlu0 %v1940_v57  ;;  %v4281_v57 = vpop.f32.mrb[16].mxu1 }
 0x264   : > { %5079 = vst [vmem:[#allocation27_spill] sm:$0xff] %v4245_v6  ;;  %v1943_v12 = vsel %vm1711_vm2, %v4245_v6, 0.0  ;;  %5096 = vst [vmem:[#allocation44_spill] sm:$0xff] %v4281_v57 }
 0x265   : > { %1944 = vadd.xlane.f32.xlu1 %v1943_v12  ;;  %v4283_v12 = vpop.f32.mrb[17].mxu1 }
 0x266   : > { %5097 = vst [vmem:[#allocation45_spill] sm:$0xff] %v4283_v12  ;;  %v4285_v50 = vpop.f32.mrb[18].mxu1 }
 0x267   : > { %5098 = vst [vmem:[#allocation46_spill] sm:$0xff] %v4285_v50  ;;  %v4287_v62 = vpop.f32.mrb[19].mxu1 }
 0x268   : > { %5099 = vst [vmem:[#allocation47_spill] sm:$0xff] %v4287_v62  ;;  %v5047_v62 = vmov 2  }
 0x290   : > { %v1870_v53 = vpop.xlane.xlu0 %1869 }
 0x291   : > { %3406 = vrcp.f32 %v1870_v53  ;;  %v4289_v53 = vpop.f32.mrb[20].mxu1 }
 0x292   : > { %5100 = vst [vmem:[#allocation48_spill] sm:$0xff] %v4289_v53  ;;  %v4291_v58 = vpop.f32.mrb[21].mxu1  ;;  %v5049_v53 = vmov 3  }
 0x293   : > { %5101 = vst [vmem:[#allocation49_spill] sm:$0xff] %v4291_v58  ;;  %v4294_v5 = vpop.f32.mrb[22].mxu1 }
 0x294   : > { %v1873_v51 = vpop.xlane.xlu1 %1872  ;;  %5102 = vst [vmem:[#allocation50_spill] sm:$0xff] %v4294_v5  ;;  %v4296_v18 = vpop.f32.mrb[23].mxu1  ;;  %v5104_v5 = vmov 1  }
 0x295   : > { %3408 = vrcp.f32 %v1873_v51  ;;  %5103 = vst [vmem:[#allocation51_spill] sm:$0xff] %v4296_v18 }
 0x298   : > { %v1876_v57 = vpop.xlane.xlu0 %1875 }
 0x299   : > { %v4298_v12 = vpop.f32.mrb[24].mxu1  ;;  %3410 = vrcp.f32 %v1876_v57 }
 0x29a   : > { %v4300_v51 = vpop.f32.mrb[25].mxu1 }
 0x29b   : > { %v3407_v4 = vpop.eup %3406  ;;  %v4307_v57 = vpop.f32.mrb[26].mxu1 }
 0x29c   : > { %v1947_v29 = vmul.f32 %v3407_v4, %v4105_v16  ;;  %v1879_v50 = vpop.xlane.xlu1 %1878 }
 0x29d   : > { %3412 = vrcp.f32 %v1879_v50  ;;  %v5105_v50 = vmov 2  }
 0x29e   : > { %2031 = vperm.xlu0 %3195, %v1947_v29   ;;  %2242 = vperm.xlu1 %3196, %v1947_v29  }
 0x29f   : > { %v3409_v16 = vpop.eup %3408 }
 0x2a0   : > { %v1882_v4 = vpop.xlane.xlu0 %1881  ;;  %v1949_v18 = vmul.f32 %v3409_v16, %v4112_v32 }
 0x2a1   : > { %3414 = vrcp.f32 %v1882_v4 }
 0x2a2   : > { %3197 = vset.pattern.permute.xlu0 %v5047_v62  ;;  %3198 = vset.pattern.permute.xlu1 %v5049_v53  ;;  %v4309_v62 = vpop.f32.mrb[27].mxu1  ;;  %v1885_v25 = vpop.xlane.xlu1 %1884 }
 0x2a3   : > { %2428 = vperm.xlu0 %3197, %v1947_v29   ;;  %2614 = vperm.xlu1 %3198, %v1947_v29   ;;  %v3411_v58 = vpop.eup %3410  ;;  %v4313_v32 = vpop.f32.mrb[28].mxu1  ;;  %3416 = vrcp.f32 %v1885_v25  ;;  %v5106_v25 = vmov 3  }
 0x2a4   : > { %v4315_v16 = vpop.f32.mrb[29].mxu1  ;;  %v1951_v8 = vmul.f32 %v3411_v58, %v4118_v22 }
 0x2a5   : > { %v4317_v4 = vpop.f32.mrb[30].mxu1 }
 0x2a6   : > { %v4326_v22 = vpop.f32.mrb[31].mxu1 }
 0x2a7   : > { %3200 = vset.pattern.permute.xlu0 %v5104_v5  ;;  %3199 = vset.pattern.permute.xlu1 %v5076_v54  ;;  %v3413_v29 = vpop.eup %3412 }
 0x2a8   : > { %2246 = vperm.xlu0 %3200, %v1949_v18   ;;  %2036 = vperm.xlu1 %3199, %v1949_v18   ;;  %v1953_v19 = vmul.f32 %v3413_v29, %v4125_v14 }
 0x2a9   : > { %v4328_v14 = vpop.f32.mrb[32].mxu1 }
 0x2aa   : > { %v4330_v58 = vpop.f32.mrb[33].mxu1 }
 0x2ac   : > { %3202 = vset.pattern.permute.xlu0 %v5049_v53  ;;  %3201 = vset.pattern.permute.xlu1 %v5105_v50  ;;  %v3415_v53 = vpop.eup %3414 }
 0x2ad   : > { %2618 = vperm.xlu0 %3202, %v1949_v18   ;;  %2432 = vperm.xlu1 %3201, %v1949_v18   ;;  %v1888_v18 = vpop.xlane.xlu0 %1887  ;;  %v1955_v17 = vmul.f32 %v3415_v53, %v4131_v30  ;;  %v3417_v29 = vpop.eup %3416 }
 0x2ae   : > { %3418 = vrcp.f32 %v1888_v18  ;;  %v1891_v30 = vpop.xlane.xlu1 %1890  ;;  %v4334_v53 = vpop.f32.mrb[34].mxu1  ;;  %v1957_v18 = vmul.f32 %v3417_v29, %v4135_v55 }
 0x2af   : > { %3420 = vrcp.f32 %v1891_v30  ;;  %v4345_v55 = vpop.f32.mrb[35].mxu1 }
 0x2b1   : > { %3209 = vset.pattern.permute.xlu0 %v5105_v50  ;;  %3203 = vset.pattern.permute.xlu1 %v5076_v54  ;;  %v1894_v63 = vpop.xlane.xlu0 %1893  ;;  %v4347_v29 = vpop.f32.mrb[36].mxu1 }
 0x2b2   : > { %2041 = vperm.xlu1 %3203, %v1951_v8   ;;  %2440 = vperm.xlu0 %3209, %v1953_v19   ;;  %3422 = vrcp.f32 %v1894_v63  ;;  %5107 = vst [vmem:[#allocation52_spill] sm:$0xff] %v4347_v29  ;;  %v4349_v21 = vpop.f32.mrb[37].mxu1 }
 0x2b3   : > { %5108 = vst [vmem:[#allocation53_spill] sm:$0xff] %v4349_v21 }
 0x2b6   : > { %3204 = vset.pattern.permute.xlu1 %v5104_v5  ;;  %3212 = vset.pattern.permute.xlu0 %v5104_v5 }
 0x2b7   : > { %2250 = vperm.xlu1 %3204, %v1951_v8   ;;  %2258 = vperm.xlu0 %3212, %v1955_v17  }
 0x2b8   : > { %v3419_v3 = vpop.eup %3418  ;;  %v1900_v31 = vpop.xlane.xlu0 %1899 }
 0x2b9   : > { %v4340_v28 = vmul.f32 %v3419_v3, %v4144_v7  ;;  %v3421_v7 = vpop.eup %3420  ;;  %v1897_v3 = vpop.xlane.xlu1 %1896 }
 0x2ba   : > { %v4357_v63 = vmul.f32 %v3421_v7, %v4148_v49  ;;  %3424 = vrcp.f32 %v1897_v3 }
 0x2bb   : > { %3205 = vset.pattern.permute.xlu1 %v5105_v50  ;;  %3214 = vset.pattern.permute.xlu0 %v5106_v25  ;;  %3426 = vrcp.f32 %v1900_v31 }
 0x2bc   : > { %2436 = vperm.xlu1 %3205, %v1951_v8   ;;  %2630 = vperm.xlu0 %3214, %v1955_v17   ;;  %v3423_v30 = vpop.eup %3422 }
 0x2bd   : > { %v4363_v56 = vmul.f32 %v3423_v30, %v4158_v11  ;;  %v1903_v30 = vpop.xlane.xlu1 %1902 }
 0x2be   : > { %3428 = vrcp.f32 %v1903_v30 }
 0x2c0   : > { %3206 = vset.pattern.permute.xlu1 %v5106_v25  ;;  %3217 = vset.pattern.permute.xlu0 %v5105_v50 }
 0x2c1   : > { %2622 = vperm.xlu1 %3206, %v1951_v8   ;;  %2448 = vperm.xlu0 %3217, %v1957_v18   ;;  %v4354_v8 = vpop.f32.mrb[38].mxu1 }
 0x2c2   : > { %5109 = vst [vmem:[#allocation54_spill] sm:$0xff] %v4354_v8  ;;  %v4368_v49 = vpop.f32.mrb[39].mxu1  ;;  %v1909_v30 = vpop.xlane.xlu1 %1908 }
 0x2c3   : > { %5110 = vst [vmem:[#allocation55_spill] sm:$0xff] %v4368_v49  ;;  %v4370_v7 = vpop.f32.mrb[40].mxu1  ;;  %v1998_v49 = vld [vmem:[%s265_s19] sm:$0xf] }
 0x2c4   : > { %5111 = vst [vmem:[#allocation56_spill] sm:$0xff] %v4370_v7  ;;  %v4372_v8 = vpop.f32.mrb[41].mxu1  ;;  %v3425_v11 = vpop.eup %3424 }
 0x2c5   : > { %3207 = vset.pattern.permute.xlu1 %v5076_v54  ;;  %3220 = vset.pattern.permute.xlu0 %v5104_v5  ;;  %5112 = vst [vmem:[#allocation57_spill] sm:$0xff] %v4372_v8  ;;  %v4383_v3 = vpop.f32.mrb[42].mxu1  ;;  %v3427_v31 = vpop.eup %3426 }
 0x2c6   : > { %2046 = vperm.xlu1 %3207, %v1953_v19   ;;  %2266 = vperm.xlu0 %3220, %v4340_v28   ;;  %5113 = vst [vmem:[#allocation58_spill] sm:$0xff] %v4383_v3  ;;  %v1906_v3 = vpop.xlane.xlu0 %1905 }
 0x2c7   : > { %3430 = vrcp.f32 %v1906_v3 }
 0x2c8   : > { %3432 = vrcp.f32 %v1909_v30 }
 0x2ca   : > { %3208 = vset.pattern.permute.xlu1 %v5104_v5  ;;  %3222 = vset.pattern.permute.xlu0 %v5106_v25  ;;  %v1912_v30 = vpop.xlane.xlu0 %1911 }
 0x2cb   : > { %2254 = vperm.xlu1 %3208, %v1953_v19   ;;  %2638 = vperm.xlu0 %3222, %v4340_v28   ;;  %3434 = vrcp.f32 %v1912_v30 }
 0x2cf   : > { %3210 = vset.pattern.permute.xlu1 %v5106_v25  ;;  %3225 = vset.pattern.permute.xlu0 %v5105_v50 }
 0x2d0   : > { %2626 = vperm.xlu1 %3210, %v1953_v19   ;;  %2456 = vperm.xlu0 %3225, %v4357_v63   ;;  %v4378_v19 = vmul.f32 %v3425_v11, %v4162_v61  ;;  %v4389_v61 = vmul.f32 %v3427_v31, %v4171_v1  ;;  %v3429_v1 = vpop.eup %3428 }
 0x2d1   : > { %v3431_v3 = vpop.eup %3430 }
 0x2d4   : > { %3211 = vset.pattern.permute.xlu1 %v5076_v54  ;;  %3228 = vset.pattern.permute.xlu0 %v5104_v5 }
 0x2d5   : > { %2051 = vperm.xlu1 %3211, %v1955_v17   ;;  %2274 = vperm.xlu0 %3228, %v4363_v56  }
 0x2d9   : > { %3213 = vset.pattern.permute.xlu1 %v5105_v50  ;;  %3230 = vset.pattern.permute.xlu0 %v5106_v25 }
 0x2da   : > { %2444 = vperm.xlu1 %3213, %v1955_v17   ;;  %2646 = vperm.xlu0 %3230, %v4363_v56   ;;  %v4394_v17 = vpop.f32.mrb[43].mxu1 }
 0x2db   : > { %5114 = vst [vmem:[#allocation59_spill] sm:$0xff] %v4394_v17  ;;  %v4396_v11 = vpop.f32.mrb[44].mxu1 }
 0x2dc   : > { %5115 = vst [vmem:[#allocation60_spill] sm:$0xff] %v4396_v11  ;;  %v4398_v8 = vpop.f32.mrb[45].mxu1 }
 0x2dd   : > { %5116 = vst [vmem:[#allocation61_spill] sm:$0xff] %v4398_v8  ;;  %v4411_v31 = vpop.f32.mrb[46].mxu1 }
 0x2de   : > { %3215 = vset.pattern.permute.xlu1 %v5076_v54  ;;  %3231 = vset.pattern.permute.xlu0 %v5076_v54  ;;  %5117 = vst [vmem:[#allocation62_spill] sm:$0xff] %v4411_v31 }
 0x2df   : > { %2056 = vperm.xlu1 %3215, %v1957_v18   ;;  %2076 = vperm.xlu0 %3231, %v4378_v19  }
 0x2e3   : > { %3216 = vset.pattern.permute.xlu1 %v5104_v5  ;;  %3233 = vset.pattern.permute.xlu0 %v5105_v50 }
 0x2e4   : > { %2262 = vperm.xlu1 %3216, %v1957_v18   ;;  %2464 = vperm.xlu0 %3233, %v4378_v19  }
 0x2e8   : > { %3218 = vset.pattern.permute.xlu1 %v5106_v25  ;;  %3236 = vset.pattern.permute.xlu0 %v5104_v5 }
 0x2e9   : > { %2634 = vperm.xlu1 %3218, %v1957_v18   ;;  %2282 = vperm.xlu0 %3236, %v4389_v61   ;;  %v4405_v18 = vmul.f32 %v3429_v1, %v4175_v52  ;;  %v4418_v52 = vmul.f32 %v3431_v3, %v4183_v24  ;;  %v3433_v24 = vpop.eup %3432  ;;  %v1915_v3 = vpop.xlane.xlu1 %1914 }
 0x2ea   : > { %v4435_v8 = vmul.f32 %v3433_v24, %v4187_v15  ;;  %v3435_v15 = vpop.eup %3434  ;;  %3436 = vrcp.f32 %v1915_v3 }
 0x2eb   : > { %v4454_v11 = vmul.f32 %v3435_v15, %v4193_v27 }
 0x2ed   : > { %3219 = vset.pattern.permute.xlu1 %v5076_v54  ;;  %3238 = vset.pattern.permute.xlu0 %v5106_v25 }
 0x2ee   : > { %2061 = vperm.xlu1 %3219, %v4340_v28   ;;  %2654 = vperm.xlu0 %3238, %v4389_v61  }
 0x2f2   : > { %3221 = vset.pattern.permute.xlu1 %v5105_v50  ;;  %3239 = vset.pattern.permute.xlu0 %v5076_v54 }
 0x2f3   : > { %2452 = vperm.xlu1 %3221, %v4340_v28   ;;  %2086 = vperm.xlu0 %3239, %v4405_v18   ;;  %v4424_v28 = vpop.f32.mrb[47].mxu1 }
 0x2f4   : > { %5118 = vst [vmem:[#allocation63_spill] sm:$0xff] %v4424_v28  ;;  %v4426_v1 = vpop.f32.mrb[48].mxu1 }
 0x2f5   : > { %5119 = vst [vmem:[#allocation64_spill] sm:$0xff] %v4426_v1  ;;  %v4428_v31 = vpop.f32.mrb[49].mxu1  ;;  %v1921_v1 = vpop.xlane.xlu1 %1920 }
 0x2f6   : > { %5120 = vst [vmem:[#allocation65_spill] sm:$0xff] %v4428_v31  ;;  %v1918_v31 = vpop.xlane.xlu0 %1917  ;;  %v4442_v30 = vpop.f32.mrb[50].mxu1 }
 0x2f7   : > { %3223 = vset.pattern.permute.xlu1 %v5076_v54  ;;  %3241 = vset.pattern.permute.xlu0 %v5105_v50  ;;  %5121 = vst [vmem:[#allocation66_spill] sm:$0xff] %v4442_v30  ;;  %3438 = vrcp.f32 %v1918_v31 }
 0x2f8   : > { %2066 = vperm.xlu1 %3223, %v4357_v63   ;;  %2472 = vperm.xlu0 %3241, %v4405_v18   ;;  %3440 = vrcp.f32 %v1921_v1 }
 0x2f9   : > { %v4451_v28 = vpop.xlane.xlu1 %1926 }
 0x2fa   : > { %v4447_v24 = vpop.xlane.xlu0 %1923 }
 0x2fb   : > { %3442 = vrcp.f32 %v4447_v24 }
 0x2fc   : > { %3224 = vset.pattern.permute.xlu1 %v5104_v5  ;;  %3244 = vset.pattern.permute.xlu0 %v5104_v5  ;;  %3444 = vrcp.f32 %v4451_v28 }
 0x2fd   : > { %2270 = vperm.xlu1 %3224, %v4357_v63   ;;  %2290 = vperm.xlu0 %3244, %v4418_v52   ;;  %v4460_v3 = vpop.xlane.xlu1 %1932 }
 0x2fe   : > { %v4456_v17 = vpop.xlane.xlu0 %1929 }
 0x2ff   : > { %3446 = vrcp.f32 %v4456_v17 }
 0x300   : > { %3448 = vrcp.f32 %v4460_v3 }
 0x301   : > { %3226 = vset.pattern.permute.xlu1 %v5106_v25  ;;  %3246 = vset.pattern.permute.xlu0 %v5106_v25  ;;  %v4475_v47 = vpop.xlane.xlu1 %1938 }
 0x302   : > { %2642 = vperm.xlu1 %3226, %v4357_v63   ;;  %2662 = vperm.xlu0 %3246, %v4418_v52   ;;  %v1999_v63 = vlaneseq  ;;  %v4473_v48 = vpop.xlane.xlu0 %1935 }
 0x303   : > { %3450 = vrcp.f32 %v4473_v48 }
 0x304   : > { %v2000_v30 = vshrl.u32 %v1999_v63, 7  ;;  %3452 = vrcp.f32 %v4475_v47 }
 0x305   : > { %v4487_v21 = vpop.xlane.xlu1 %1944 }
 0x306   : > { %3227 = vset.pattern.permute.xlu1 %v5076_v54  ;;  %3247 = vset.pattern.permute.xlu0 %v5076_v54  ;;  %v2001_v63 = vsub.s32 0, %v2000_v30  ;;  %v2213_v7 = vsub.s32 1, %v2000_v30  ;;  %v4485_v60 = vpop.xlane.xlu0 %1941  ;;  %5125 = vst [vmem:[#allocation70_spill] sm:$0xff] %v4487_v21  ;;  %v2585_v46 = vsub.s32 3, %v2000_v30 }
 0x307   : > { %2071 = vperm.xlu1 %3227, %v4363_v56   ;;  %2096 = vperm.xlu0 %3247, %v4435_v8   ;;  %3454 = vrcp.f32 %v4485_v60 }
 0x308   : > { %v4481_v6 = vrot.slane %v1998_v49, %v2001_v63 }
 0x30b   : > { %3229 = vset.pattern.permute.xlu1 %v5105_v50  ;;  %3249 = vset.pattern.permute.xlu0 %v5105_v50 }
 0x30c   : > { %2460 = vperm.xlu1 %3229, %v4363_v56   ;;  %2480 = vperm.xlu0 %3249, %v4435_v8   ;;  %v4464_v56 = vpop.f32.mrb[51].mxu1 }
 0x30d   : > { %5122 = vst [vmem:[#allocation67_spill] sm:$0xff] %v4464_v56  ;;  %v4469_v27 = vpop.f32.mrb[52].mxu1  ;;  %v3437_v56 = vpop.eup %3436 }
 0x30e   : > { %5123 = vst [vmem:[#allocation68_spill] sm:$0xff] %v4469_v27  ;;  %v4471_v15 = vpop.f32.mrb[53].mxu1  ;;  %v2399_v27 = vsub.s32 2, %v2000_v30  ;;  %v4490_v29 = vmul.f32 %v3437_v56, %v4197_v20  ;;  %v4502_v30 = vrot.slane %v1998_v49, %v2585_v46 }
 0x30f   : > { %5124 = vst [vmem:[#allocation69_spill] sm:$0xff] %v4471_v15  ;;  %v4483_v15 = vrot.slane %v1998_v49, %v2213_v7  ;;  %v2003_v7 = vadd.f32 %v4481_v6, %v3908_v33  ;;  %v4504_v21 = vpop.f32.mrb[54].mxu1  ;;  %v3439_v33 = vpop.eup %3438 }
 0x310   : > { %3232 = vset.pattern.permute.xlu1 %v5104_v5  ;;  %3252 = vset.pattern.permute.xlu0 %v5104_v5 }
 0x311   : > { %2278 = vperm.xlu1 %3232, %v4378_v19   ;;  %2298 = vperm.xlu0 %3252, %v4454_v11   ;;  %v2215_v31 = vadd.f32 %v4483_v15, %v3910_v34  ;;  %v2587_v34 = vadd.f32 %v4502_v30, %v4300_v51  ;;  %v2004_v51 = vadd.f32 %v4481_v6, %v3912_v35  ;;  %v3441_v35 = vpop.eup %3440 }
 0x315   : > { %3234 = vset.pattern.permute.xlu1 %v5106_v25  ;;  %3254 = vset.pattern.permute.xlu0 %v5106_v25 }
 0x316   : > { %2650 = vperm.xlu1 %3234, %v4378_v19   ;;  %2670 = vperm.xlu0 %3254, %v4454_v11   ;;  %v4496_v19 = vrot.slane %v1998_v49, %v2399_v27 }
 0x318   : > { %v2401_v10 = vadd.f32 %v4496_v19, %v4298_v12  ;;  %v4516_v12 = vmul.f32 %v3439_v33, %v4203_v13  ;;  %v2403_v28 = vadd.f32 %v4496_v19, %v4313_v32  ;;  %v2589_v32 = vadd.f32 %v4502_v30, %v4315_v16 }
 0x31a   : > { %3235 = vset.pattern.permute.xlu1 %v5076_v54  ;;  %3255 = vset.pattern.permute.xlu0 %v5076_v54 }
 0x31b   : > { %2081 = vperm.xlu1 %3235, %v4389_v61   ;;  %2106 = vperm.xlu0 %3255, %v4490_v29  }
 0x31d   : > { %v2032_v63 = vpop.permute.xlu0 %2031  ;;  %v2243_v20 = vpop.permute.xlu1 %2242 }
 0x31e   : > { %v2159_v56 = vmul.f32 %v2032_v63, %v2003_v7  ;;  %v2345_v45 = vmul.f32 %v2243_v20, %v2215_v31 }
 0x31f   : > { %3237 = vset.pattern.permute.xlu1 %v5105_v50  ;;  %3257 = vset.pattern.permute.xlu0 %v5105_v50 }
 0x320   : > { %v2371_v27 = vadd.f32 %v2345_v45, %v2159_v56  ;;  %2468 = vperm.xlu1 %3237, %v4389_v61   ;;  %2488 = vperm.xlu0 %3257, %v4490_v29   ;;  %v4522_v61 = vpop.f32.mrb[55].mxu1 }
 0x321   : > { %v4528_v13 = vpop.f32.mrb[56].mxu1 }
 0x322   : > { %v2429_v46 = vpop.permute.xlu0 %2428  ;;  %v2615_v49 = vpop.permute.xlu1 %2614 }
 0x323   : > { %v2531_v7 = vmul.f32 %v2429_v46, %v2401_v10  ;;  %v2717_v45 = vmul.f32 %v2615_v49, %v2587_v34  ;;  %v2216_v10 = vadd.f32 %v4483_v15, %v3914_v36  ;;  %v2402_v34 = vadd.f32 %v4496_v19, %v4307_v57 }
 0x324   : > { %3240 = vset.pattern.permute.xlu1 %v5104_v5  ;;  %3260 = vset.pattern.permute.xlu0 %v5104_v5  ;;  %v2588_v46 = vadd.f32 %v4502_v30, %v4309_v62  ;;  %v4545_v57 = vmul.f32 %v3441_v35, %v4207_v2  ;;  %v3443_v2 = vpop.eup %3442 }
 0x325   : > { %v2557_v1 = vadd.f32 %v2531_v7, %v2371_v27  ;;  %2286 = vperm.xlu1 %3240, %v4405_v18   ;;  %2306 = vperm.xlu0 %3260, %v4516_v12   ;;  %v4530_v27 = vpop.f32.mrb[57].mxu1  ;;  %v4568_v35 = vmul.f32 %v3443_v2, %v4213_v26 }
 0x327   : > { %v2743_v31 = vadd.f32 %v2717_v45, %v2557_v1  ;;  %v2247_v63 = vpop.permute.xlu0 %2246  ;;  %v2037_v20 = vpop.permute.xlu1 %2036 }
 0x328   : > { %v2346_v56 = vmul.f32 %v2247_v63, %v2216_v10  ;;  %v2160_v33 = vmul.f32 %v2037_v20, %v2004_v51  ;;  %v4553_v10 = vpop.f32.mrb[58].mxu1  ;;  %v2217_v63 = vadd.f32 %v4483_v15, %v3918_v38 }
 0x329   : > { %2769 = vst [vmem:[%s4532_s4] sm:$0xff] %v2743_v31  ;;  %3242 = vset.pattern.permute.xlu1 %v5106_v25  ;;  %3262 = vset.pattern.permute.xlu0 %v5106_v25  ;;  %v2005_v31 = vadd.f32 %v4481_v6, %v3916_v37  ;;  %v4576_v37 = vpop.f32.mrb[59].mxu1 }
 0x32a   : > { %v2372_v36 = vadd.f32 %v2346_v56, %v2160_v33  ;;  %2658 = vperm.xlu1 %3242, %v4405_v18   ;;  %2678 = vperm.xlu0 %3262, %v4516_v12   ;;  %v4578_v38 = vpop.f32.mrb[60].mxu1 }
 0x32c   : > { %v2619_v49 = vpop.permute.xlu0 %2618  ;;  %v2433_v7 = vpop.permute.xlu1 %2432 }
 0x32d   : > { %v2532_v1 = vmul.f32 %v2433_v7, %v2402_v34  ;;  %v2718_v24 = vmul.f32 %v2619_v49, %v2588_v46  ;;  %v4582_v49 = vpop.f32.mrb[61].mxu1  ;;  %v3445_v7 = vpop.eup %3444 }
 0x32e   : > { %3243 = vset.pattern.permute.xlu1 %v5076_v54  ;;  %3263 = vset.pattern.permute.xlu0 %v5076_v54  ;;  %v4601_v17 = vpop.f32.mrb[62].mxu1 }
 0x32f   : > { %v2558_v45 = vadd.f32 %v2532_v1, %v2372_v36  ;;  %2091 = vperm.xlu1 %3243, %v4418_v52   ;;  %2116 = vperm.xlu0 %3263, %v4545_v57  }
 0x331   : > { %v2744_v18 = vadd.f32 %v2718_v24, %v2558_v45  ;;  %v4551_v51 = vpop.permute.xlu0 %2440  ;;  %v2042_v62 = vpop.permute.xlu1 %2041 }
 0x332   : > { %v2161_v33 = vmul.f32 %v2042_v62, %v2005_v31  ;;  %v4594_v62 = vmul.f32 %v3445_v7, %v4217_v23  ;;  %v3447_v23 = vpop.eup %3446  ;;  %v2006_v31 = vadd.f32 %v4481_v6, %v3920_v39 }
 0x333   : > { %2770 = vst [vmem:[%s4532_s4 + $0x8] sm:$0xff] %v2744_v18  ;;  %3245 = vset.pattern.permute.xlu1 %v5105_v50  ;;  %3265 = vset.pattern.permute.xlu0 %v5105_v50 }
 0x334   : > { %2476 = vperm.xlu1 %3245, %v4418_v52   ;;  %2496 = vperm.xlu0 %3265, %v4545_v57  }
 0x336   : > { %v4565_v20 = vpop.permute.xlu0 %2258  ;;  %v2251_v56 = vpop.permute.xlu1 %2250 }
 0x337   : > { %v2347_v34 = vmul.f32 %v2251_v56, %v2217_v63  ;;  %v2218_v63 = vadd.f32 %v4483_v15, %v3922_v40  ;;  %v2404_v56 = vadd.f32 %v4496_v19, %v4317_v4  ;;  %v4628_v4 = vpop.f32.mrb[63].mxu1 }
 0x338   : > { %3248 = vset.pattern.permute.xlu1 %v5104_v5  ;;  %3268 = vset.pattern.permute.xlu0 %v5104_v5 }
 0x339   : > { %v2373_v52 = vadd.f32 %v2347_v34, %v2161_v33  ;;  %2294 = vperm.xlu1 %3248, %v4435_v8   ;;  %2314 = vperm.xlu0 %3268, %v4568_v35   ;;  %v2534_v39 = vmul.f32 %v4551_v51, %v2404_v56  ;;  %v3449_v51 = vpop.eup %3448 }
 0x33a   : > { %v4648_v48 = vmul.f32 %v3449_v51, %v4227_v9  ;;  %v2592_v51 = vadd.f32 %v4502_v30, %v4345_v55 }
 0x33b   : > { %v4580_v36 = vpop.permute.xlu0 %2630  ;;  %v2437_v26 = vpop.permute.xlu1 %2436 }
 0x33c   : > { %v2533_v46 = vmul.f32 %v2437_v26, %v2403_v28 }
 0x33d   : > { %3250 = vset.pattern.permute.xlu1 %v5106_v25  ;;  %3270 = vset.pattern.permute.xlu0 %v5106_v25 }
 0x33e   : > { %v2559_v1 = vadd.f32 %v2533_v46, %v2373_v52  ;;  %2666 = vperm.xlu1 %3250, %v4435_v8   ;;  %2686 = vperm.xlu0 %3270, %v4568_v35   ;;  %v4617_v52 = vmul.f32 %v3447_v23, %v4223_v0  ;;  %v4630_v0 = vpop.f32.mrb[64].mxu1 }
 0x340   : > { %v2623_v24 = vpop.permute.xlu1 %2622  ;;  %v4591_v45 = vpop.permute.xlu0 %2448 }
 0x341   : > { %v2719_v18 = vmul.f32 %v2623_v24, %v2589_v32  ;;  %v4632_v32 = vpop.f32.mrb[65].mxu1  ;;  %v2219_v24 = vadd.f32 %v4483_v15, %v3926_v42  ;;  %v2591_v42 = vadd.f32 %v4502_v30, %v4330_v58 }
 0x342   : > { %3251 = vset.pattern.permute.xlu1 %v5076_v54  ;;  %3271 = vset.pattern.permute.xlu0 %v5076_v54 }
 0x343   : > { %v2745_v16 = vadd.f32 %v2719_v18, %v2559_v1  ;;  %2101 = vperm.xlu1 %3251, %v4454_v11   ;;  %2126 = vperm.xlu0 %3271, %v4594_v62   ;;  %v2007_v1 = vadd.f32 %v4481_v6, %v3924_v41  ;;  %v2721_v56 = vmul.f32 %v4580_v36, %v2591_v42 }
 0x344   : > { %v2220_v36 = vadd.f32 %v4483_v15, %v3930_v44 }
 0x345   : > { %2771 = vst [vmem:[%s4532_s4 + $0x10] sm:$0xff] %v2745_v16  ;;  %v2047_v8 = vpop.permute.xlu1 %2046  ;;  %v4603_v2 = vpop.permute.xlu0 %2266 }
 0x346   : > { %v2162_v34 = vmul.f32 %v2047_v8, %v2006_v31  ;;  %v2349_v8 = vmul.f32 %v4565_v20, %v2219_v24 }
 0x347   : > { %3253 = vset.pattern.permute.xlu1 %v5105_v50  ;;  %3273 = vset.pattern.permute.xlu0 %v5105_v50 }
 0x348   : > { %2484 = vperm.xlu1 %3253, %v4454_v11   ;;  %2504 = vperm.xlu0 %3273, %v4594_v62   ;;  %v2590_v11 = vadd.f32 %v4502_v30, %v4326_v22 }
 0x34a   : > { %v2255_v33 = vpop.permute.xlu1 %2254  ;;  %v4624_v3 = vpop.permute.xlu0 %2638 }
 0x34b   : > { %v2348_v28 = vmul.f32 %v2255_v33, %v2218_v63  ;;  %v4660_v63 = vpop.f32.mrb[66].mxu1 }
 0x34c   : > { %3256 = vset.pattern.permute.xlu1 %v5104_v5  ;;  %3276 = vset.pattern.permute.xlu0 %v5104_v5  ;;  %v4678_v47 = vpop.f32.mrb[67].mxu1 }
 0x34d   : > { %v2374_v40 = vadd.f32 %v2348_v28, %v2162_v34  ;;  %2302 = vperm.xlu1 %3256, %v4490_v29   ;;  %2322 = vperm.xlu0 %3276, %v4617_v52  }
 0x34f   : > { %v2560_v26 = vadd.f32 %v2534_v39, %v2374_v40  ;;  %v2627_v22 = vpop.permute.xlu1 %2626  ;;  %v4643_v18 = vpop.permute.xlu0 %2456 }
 0x350   : > { %v2720_v46 = vmul.f32 %v2627_v22, %v2590_v11  ;;  %v4686_v39 = vpop.f32.mrb[68].mxu1 }
 0x351   : > { %3258 = vset.pattern.permute.xlu1 %v5106_v25  ;;  %3278 = vset.pattern.permute.xlu0 %v5106_v25 }
 0x352   : > { %v2746_v7 = vadd.f32 %v2720_v46, %v2560_v26  ;;  %2674 = vperm.xlu1 %3258, %v4490_v29   ;;  %2694 = vperm.xlu0 %3278, %v4617_v52   ;;  %v2405_v29 = vadd.f32 %v4496_v19, %v4328_v14  ;;  %v3451_v14 = vpop.eup %3450  ;;  %v4688_v46 = vpop.f32.mrb[69].mxu1 }
 0x353   : > { %v4671_v11 = vmul.f32 %v3451_v14, %v4233_v59  ;;  %v2406_v59 = vadd.f32 %v4496_v19, %v4334_v53 }
 0x354   : > { %2772 = vst [vmem:[%s4532_s4 + $0x18] sm:$0xff] %v2746_v7  ;;  %v2052_v16 = vpop.permute.xlu1 %2051  ;;  %v4658_v20 = vpop.permute.xlu0 %2274 }
 0x355   : > { %v2163_v23 = vmul.f32 %v2052_v16, %v2007_v1  ;;  %v2536_v44 = vmul.f32 %v4591_v45, %v2406_v59  ;;  %v5126_v16 = vld [vmem:[#allocation25_spill] sm:$0xff] }
 0x356   : > { %3259 = vset.pattern.permute.xlu1 %v5076_v54  ;;  %3279 = vset.pattern.permute.xlu0 %v5076_v54 }
 0x357   : > { %v2375_v41 = vadd.f32 %v2349_v8, %v2163_v23  ;;  %2111 = vperm.xlu1 %3259, %v4516_v12   ;;  %2136 = vperm.xlu0 %3279, %v4648_v48   ;;  %v5127_v23 = vld [vmem:[#allocation70_spill] sm:$0xff] }
 0x358   : > { %3456 = vrcp.f32 %v5127_v23 }
 0x359   : > { %v2445_v9 = vpop.permute.xlu1 %2444  ;;  %v4668_v28 = vpop.permute.xlu0 %2646 }
 0x35a   : > { %v2535_v31 = vmul.f32 %v2445_v9, %v2405_v29 }
 0x35b   : > { %3261 = vset.pattern.permute.xlu1 %v5105_v50  ;;  %3281 = vset.pattern.permute.xlu0 %v5105_v50 }
 0x35c   : > { %v2561_v33 = vadd.f32 %v2535_v31, %v2375_v41  ;;  %2492 = vperm.xlu1 %3261, %v4516_v12   ;;  %2512 = vperm.xlu0 %3281, %v4648_v48   ;;  %v2008_v12 = vadd.f32 %v4481_v6, %v3928_v43  ;;  %v3453_v43 = vpop.eup %3452  ;;  %v5129_v41 = vld [vmem:[#allocation10_spill] sm:$0xff] }
 0x35d   : > { %v4701_v8 = vmul.f32 %v3453_v43, %v5126_v16  ;;  %v2221_v42 = vadd.f32 %v4483_v15, %v5129_v41 }
 0x35e   : > { %v2747_v58 = vadd.f32 %v2721_v56, %v2561_v33  ;;  %v2057_v34 = vpop.permute.xlu1 %2056  ;;  %v4692_v7 = vpop.permute.xlu0 %2076  ;;  %v5130_v33 = vld [vmem:[#allocation52_spill] sm:$0xff] }
 0x35f   : > { %v2164_v26 = vmul.f32 %v2057_v34, %v2008_v12  ;;  %v2351_v31 = vmul.f32 %v4603_v2, %v2221_v42  ;;  %v4716_v56 = vpop.f32.mrb[70].mxu1  ;;  %v3455_v34 = vpop.eup %3454  ;;  %v5136_v42 = vld [vmem:[#allocation54_spill] sm:$0xff] }
 0x360   : > { %2773 = vst [vmem:[%s4532_s4 + $0x20] sm:$0xff] %v2747_v58  ;;  %3264 = vset.pattern.permute.xlu1 %v5104_v5  ;;  %3284 = vset.pattern.permute.xlu0 %v5104_v5  ;;  %v2407_v58 = vadd.f32 %v4496_v19, %v5130_v33  ;;  %v4741_v23 = vpop.f32.mrb[71].mxu1 }
 0x361   : > { %2310 = vperm.xlu1 %3264, %v4545_v57   ;;  %2330 = vperm.xlu0 %3284, %v4671_v11  }
 0x362   : > { %v3457_v43 = vpop.eup %3456 }
 0x363   : > { %v2263_v40 = vpop.permute.xlu1 %2262  ;;  %v4706_v60 = vpop.permute.xlu0 %2464 }
 0x364   : > { %v2350_v22 = vmul.f32 %v2263_v40, %v2220_v36  ;;  %v5131_v36 = vld [vmem:[#allocation53_spill] sm:$0xff] }
 0x365   : > { %3266 = vset.pattern.permute.xlu1 %v5106_v25  ;;  %3286 = vset.pattern.permute.xlu0 %v5106_v25  ;;  %v2593_v59 = vadd.f32 %v4502_v30, %v5131_v36 }
 0x366   : > { %v2376_v53 = vadd.f32 %v2350_v22, %v2164_v26  ;;  %2682 = vperm.xlu1 %3266, %v4545_v57   ;;  %2702 = vperm.xlu0 %3286, %v4671_v11   ;;  %v5128_v57 = vld [vmem:[#allocation9_spill] sm:$0xff]  ;;  %v5132_v22 = vld [vmem:[#allocation26_spill] sm:$0xff] }
 0x367   : > { %v2009_v29 = vadd.f32 %v4481_v6, %v5128_v57 }
 0x368   : > { %v2562_v1 = vadd.f32 %v2536_v44, %v2376_v53  ;;  %v2635_v24 = vpop.permute.xlu1 %2634  ;;  %v4726_v2 = vpop.permute.xlu0 %2282 }
 0x369   : > { %v2722_v55 = vmul.f32 %v2635_v24, %v2592_v51  ;;  %v4729_v51 = vmul.f32 %v3455_v34, %v5132_v22 }
 0x36a   : > { %3267 = vset.pattern.permute.xlu1 %v5076_v54  ;;  %3287 = vset.pattern.permute.xlu0 %v5076_v54 }
 0x36b   : > { %v2748_v45 = vadd.f32 %v2722_v55, %v2562_v1  ;;  %2121 = vperm.xlu1 %3267, %v4568_v35   ;;  %2146 = vperm.xlu0 %3287, %v4701_v8   ;;  %v5133_v55 = vld [vmem:[#allocation27_spill] sm:$0xff] }
 0x36c   : > { %v4739_v16 = vmul.f32 %v3457_v43, %v5133_v55 }
 0x36d   : > { %2774 = vst [vmem:[%s4532_s4 + $0x28] sm:$0xff] %v2748_v45  ;;  %v2062_v9 = vpop.permute.xlu1 %2061  ;;  %v4736_v53 = vpop.permute.xlu0 %2654  ;;  %v5134_v45 = vld [vmem:[#allocation11_spill] sm:$0xff] }
 0x36e   : > { %v2165_v14 = vmul.f32 %v2062_v9, %v2009_v29  ;;  %v2010_v57 = vadd.f32 %v4481_v6, %v5134_v45  ;;  %v5135_v29 = vld [vmem:[#allocation12_spill] sm:$0xff]  ;;  %v2408_v9 = vadd.f32 %v4496_v19, %v5136_v42 }
 0x36f   : > { %3269 = vset.pattern.permute.xlu1 %v5105_v50  ;;  %3289 = vset.pattern.permute.xlu0 %v5105_v50  ;;  %v2222_v41 = vadd.f32 %v4483_v15, %v5135_v29 }
 0x370   : > { %v2377_v12 = vadd.f32 %v2351_v31, %v2165_v14  ;;  %2500 = vperm.xlu1 %3269, %v4568_v35   ;;  %2520 = vperm.xlu0 %3289, %v4701_v8   ;;  %v2723_v35 = vmul.f32 %v4624_v3, %v2593_v59  ;;  %v4748_v3 = vpop.f32.mrb[72].mxu1  ;;  %v2538_v59 = vmul.f32 %v4643_v18, %v2408_v9  ;;  %v5138_v18 = vld [vmem:[#allocation13_spill] sm:$0xff] }
 0x371   : > { %v4756_v31 = vpop.f32.mrb[73].mxu1 }
 0x372   : > { %v2453_v40 = vpop.permute.xlu1 %2452  ;;  %v4758_v33 = vpop.permute.xlu0 %2086 }
 0x373   : > { %v2537_v26 = vmul.f32 %v2453_v40, %v2407_v58  ;;  %v4760_v34 = vpop.f32.mrb[74].mxu1 }
 0x374   : > { %3272 = vset.pattern.permute.xlu1 %v5104_v5  ;;  %3292 = vset.pattern.permute.xlu0 %v5104_v5 }
 0x375   : > { %v2563_v44 = vadd.f32 %v2537_v26, %v2377_v12  ;;  %2318 = vperm.xlu1 %3272, %v4594_v62   ;;  %2338 = vperm.xlu0 %3292, %v4729_v51   ;;  %v5137_v12 = vld [vmem:[#allocation55_spill] sm:$0xff] }
 0x376   : > { %v2594_v36 = vadd.f32 %v4502_v30, %v5137_v12 }
 0x377   : > { %v2749_v1 = vadd.f32 %v2723_v35, %v2563_v44  ;;  %v2067_v24 = vpop.permute.xlu1 %2066  ;;  %v4769_v35 = vpop.permute.xlu0 %2472 }
 0x378   : > { %v2166_v58 = vmul.f32 %v2067_v24, %v2010_v57  ;;  %v5139_v24 = vld [vmem:[#allocation14_spill] sm:$0xff] }
 0x379   : > { %2775 = vst [vmem:[%s4532_s4 + $0x30] sm:$0xff] %v2749_v1  ;;  %3274 = vset.pattern.permute.xlu1 %v5106_v25  ;;  %3294 = vset.pattern.permute.xlu0 %v5076_v54  ;;  %v2011_v1 = vadd.f32 %v4481_v6, %v5138_v18  ;;  %v2223_v55 = vadd.f32 %v4483_v15, %v5139_v24 }
 0x37a   : > { %2690 = vperm.xlu1 %3274, %v4594_v62   ;;  %2156 = vperm.xlu0 %3294, %v4739_v16  }
 0x37b   : > { %v2353_v57 = vmul.f32 %v4658_v20, %v2223_v55 }
 0x37c   : > { %v2271_v14 = vpop.permute.xlu1 %2270  ;;  %v4784_v9 = vpop.permute.xlu0 %2290 }
 0x37d   : > { %v2352_v62 = vmul.f32 %v2271_v14, %v2222_v41  ;;  %v5140_v41 = vld [vmem:[#allocation56_spill] sm:$0xff]  ;;  %v5141_v14 = vld [vmem:[#allocation57_spill] sm:$0xff] }
 0x37e   : > { %3275 = vset.pattern.permute.xlu1 %v5076_v54  ;;  %3296 = vset.pattern.permute.xlu0 %v5105_v50  ;;  %v2409_v42 = vadd.f32 %v4496_v19, %v5140_v41 }
 0x37f   : > { %v2378_v40 = vadd.f32 %v2352_v62, %v2166_v58  ;;  %2131 = vperm.xlu1 %3275, %v4617_v52   ;;  %2528 = vperm.xlu0 %3296, %v4739_v16   ;;  %v2595_v58 = vadd.f32 %v4502_v30, %v5141_v14 }
 0x381   : > { %v2564_v26 = vadd.f32 %v2538_v59, %v2378_v40  ;;  %v2643_v22 = vpop.permute.xlu1 %2642  ;;  %v2725_v20 = vmul.f32 %v4668_v28, %v2595_v58  ;;  %v5142_v59 = vld [vmem:[#allocation15_spill] sm:$0xff]  ;;  %v4798_v18 = vpop.permute.xlu0 %2662  ;;  %v5146_v58 = vld [vmem:[#allocation17_spill] sm:$0xff] }
 0x382   : > { %v2724_v43 = vmul.f32 %v2643_v22, %v2594_v36  ;;  %v2012_v40 = vadd.f32 %v4481_v6, %v5142_v59  ;;  %v5145_v28 = vld [vmem:[#allocation59_spill] sm:$0xff] }
 0x383   : > { %3277 = vset.pattern.permute.xlu1 %v5105_v50  ;;  %3297 = vset.pattern.permute.xlu0 %v5106_v25 }
 0x384   : > { %v2750_v44 = vadd.f32 %v2724_v43, %v2564_v26  ;;  %2508 = vperm.xlu1 %3277, %v4617_v52   ;;  %2710 = vperm.xlu0 %3297, %v4729_v51   ;;  %v5143_v26 = vld [vmem:[#allocation16_spill] sm:$0xff]  ;;  %v5144_v43 = vld [vmem:[#allocation58_spill] sm:$0xff]  ;;  %v2168_v55 = vmul.f32 %v4692_v7, %v2012_v40 }
 0x385   : > { %v2224_v22 = vadd.f32 %v4483_v15, %v5143_v26  ;;  %v5148_v26 = vld [vmem:[#allocation60_spill] sm:$0xff] }
 0x386   : > { %2776 = vst [vmem:[%s4532_s4 + $0x38] sm:$0xff] %v2750_v44  ;;  %v2072_v45 = vpop.permute.xlu1 %2071  ;;  %v2410_v44 = vadd.f32 %v4496_v19, %v5144_v43  ;;  %v4807_v41 = vpop.permute.xlu0 %2096 }
 0x387   : > { %v2167_v29 = vmul.f32 %v2072_v45, %v2011_v1 }
 0x388   : > { %3280 = vset.pattern.permute.xlu1 %v5104_v5 }
 0x389   : > { %v2379_v52 = vadd.f32 %v2353_v57, %v2167_v29  ;;  %2326 = vperm.xlu1 %3280, %v4648_v48   ;;  %v2540_v57 = vmul.f32 %v4706_v60, %v2410_v44 }
 0x38b   : > { %v2461_v62 = vpop.permute.xlu1 %2460  ;;  %v4817_v59 = vpop.permute.xlu0 %2480 }
 0x38c   : > { %v2539_v12 = vmul.f32 %v2461_v62, %v2409_v42  ;;  %v2013_v62 = vadd.f32 %v4481_v6, %v5146_v58 }
 0x38d   : > { %3282 = vset.pattern.permute.xlu1 %v5106_v25 }
 0x38e   : > { %v2565_v36 = vadd.f32 %v2539_v12, %v2379_v52  ;;  %2698 = vperm.xlu1 %3282, %v4648_v48   ;;  %v2596_v48 = vadd.f32 %v4502_v30, %v5145_v28  ;;  %v5147_v12 = vld [vmem:[#allocation18_spill] sm:$0xff]  ;;  %v5150_v28 = vld [vmem:[#allocation19_spill] sm:$0xff] }
 0x390   : > { %v2751_v1 = vadd.f32 %v2725_v20, %v2565_v36  ;;  %v2279_v24 = vpop.permute.xlu1 %2278  ;;  %v2225_v20 = vadd.f32 %v4483_v15, %v5147_v12  ;;  %v5153_v12 = vld [vmem:[#allocation63_spill] sm:$0xff] }
 0x391   : > { %v2354_v45 = vmul.f32 %v2279_v24, %v2224_v22  ;;  %v2411_v22 = vadd.f32 %v4496_v19, %v5148_v26 }
 0x392   : > { %2777 = vst [vmem:[%s4532_s4 + $0x40] sm:$0xff] %v2751_v1  ;;  %3283 = vset.pattern.permute.xlu1 %v5076_v54  ;;  %v2355_v36 = vmul.f32 %v4726_v2, %v2225_v20 }
 0x393   : > { %v2380_v29 = vadd.f32 %v2354_v45, %v2168_v55  ;;  %2141 = vperm.xlu1 %3283, %v4671_v11   ;;  %v4825_v55 = vpop.permute.xlu0 %2298 }
 0x395   : > { %v2566_v42 = vadd.f32 %v2540_v57, %v2380_v29  ;;  %v2651_v52 = vpop.permute.xlu1 %2650  ;;  %v5151_v57 = vld [vmem:[#allocation20_spill] sm:$0xff] }
 0x396   : > { %v2726_v14 = vmul.f32 %v2651_v52, %v2596_v48  ;;  %v2014_v48 = vadd.f32 %v4481_v6, %v5150_v28  ;;  %v2226_v29 = vadd.f32 %v4483_v15, %v5151_v57  ;;  %v5157_v28 = vld [vmem:[#allocation65_spill] sm:$0xff] }
 0x397   : > { %3285 = vset.pattern.permute.xlu1 %v5105_v50  ;;  %v2671_v20 = vpop.permute.xlu0 %2670 }
 0x398   : > { %v2752_v7 = vadd.f32 %v2726_v14, %v2566_v42  ;;  %2516 = vperm.xlu1 %3285, %v4671_v11   ;;  %v5149_v11 = vld [vmem:[#allocation61_spill] sm:$0xff]  ;;  %v5152_v42 = vld [vmem:[#allocation62_spill] sm:$0xff]  ;;  %v2170_v58 = vmul.f32 %v4758_v33, %v2014_v48  ;;  %v2599_v48 = vadd.f32 %v4502_v30, %v5157_v28  ;;  %v5164_v28 = vld [vmem:[#allocation68_spill] sm:$0xff] }
 0x399   : > { %v2597_v44 = vadd.f32 %v4502_v30, %v5149_v11  ;;  %v2412_v52 = vadd.f32 %v4496_v19, %v5152_v42  ;;  %v5155_v11 = vld [vmem:[#allocation22_spill] sm:$0xff] }
 0x39a   : > { %2778 = vst [vmem:[%s4532_s4 + $0x48] sm:$0xff] %v2752_v7  ;;  %v2082_v60 = vpop.permute.xlu1 %2081 }
 0x39b   : > { %v2169_v40 = vmul.f32 %v2082_v60, %v2013_v62  ;;  %v2727_v2 = vmul.f32 %v4736_v53, %v2597_v44  ;;  %v2598_v53 = vadd.f32 %v4502_v30, %v5153_v12  ;;  %v2107_v44 = vpop.permute.xlu0 %2106 }
 0x39c   : > { %3288 = vset.pattern.permute.xlu1 %v5104_v5 }
 0x39d   : > { %v2381_v43 = vadd.f32 %v2355_v36, %v2169_v40  ;;  %2334 = vperm.xlu1 %3288, %v4701_v8  }
 0x39f   : > { %v2469_v1 = vpop.permute.xlu1 %2468  ;;  %v2489_v57 = vpop.permute.xlu0 %2488 }
 0x3a0   : > { %v2541_v24 = vmul.f32 %v2469_v1, %v2411_v22  ;;  %v5154_v22 = vld [vmem:[#allocation21_spill] sm:$0xff] }
 0x3a1   : > { %3290 = vset.pattern.permute.xlu1 %v5106_v25 }
 0x3a2   : > { %v2567_v45 = vadd.f32 %v2541_v24, %v2381_v43  ;;  %2706 = vperm.xlu1 %3290, %v4701_v8   ;;  %v2542_v8 = vmul.f32 %v4769_v35, %v2412_v52  ;;  %v2015_v43 = vadd.f32 %v4481_v6, %v5154_v22 }
 0x3a4   : > { %v2753_v14 = vadd.f32 %v2727_v2, %v2567_v45  ;;  %v2287_v7 = vpop.permute.xlu1 %2286  ;;  %v4851_v2 = vpop.f32.mrb[75].mxu1  ;;  %v5156_v45 = vld [vmem:[#allocation64_spill] sm:$0xff] }
 0x3a5   : > { %v2356_v62 = vmul.f32 %v2287_v7, %v2226_v29  ;;  %v5159_v7 = vld [vmem:[#allocation24_spill] sm:$0xff] }
 0x3a6   : > { %2779 = vst [vmem:[%s4532_s4 + $0x50] sm:$0xff] %v2753_v14  ;;  %3291 = vset.pattern.permute.xlu1 %v5076_v54  ;;  %v2227_v54 = vadd.f32 %v4483_v15, %v5155_v11  ;;  %v5158_v14 = vld [vmem:[#allocation23_spill] sm:$0xff]  ;;  %v5162_v11 = vld [vmem:[#allocation29_spill] sm:$0xff] }
 0x3a7   : > { %v2382_v60 = vadd.f32 %v2356_v62, %v2170_v58  ;;  %2151 = vperm.xlu1 %3291, %v4729_v51   ;;  %v2228_v58 = vadd.f32 %v4483_v15, %v5159_v7  ;;  %v5160_v62 = vld [vmem:[#allocation66_spill] sm:$0xff] }
 0x3a8   : > { %v2357_v1 = vmul.f32 %v4784_v9, %v2227_v54  ;;  %v2729_v9 = vmul.f32 %v4798_v18, %v2599_v48  ;;  %v2414_v12 = vadd.f32 %v4496_v19, %v5160_v62  ;;  %v5161_v18 = vld [vmem:[#allocation67_spill] sm:$0xff]  ;;  %v2229_v54 = vadd.f32 %v4483_v15, %v5162_v11 }
 0x3a9   : > { %v2568_v36 = vadd.f32 %v2542_v8, %v2382_v60  ;;  %v2659_v40 = vpop.permute.xlu1 %2658 }
 0x3aa   : > { %v2728_v26 = vmul.f32 %v2659_v40, %v2598_v53  ;;  %v2600_v40 = vadd.f32 %v4502_v30, %v5161_v18 }
 0x3ab   : > { %3293 = vset.pattern.permute.xlu1 %v5105_v50  ;;  %v2413_v50 = vadd.f32 %v4496_v19, %v5156_v45 }
 0x3ac   : > { %v2754_v33 = vadd.f32 %v2728_v26, %v2568_v36  ;;  %2524 = vperm.xlu1 %3293, %v4729_v51  }
 0x3ae   : > { %2780 = vst [vmem:[%s4532_s4 + $0x58] sm:$0xff] %v2754_v33  ;;  %v2092_v35 = vpop.permute.xlu1 %2091 }
 0x3af   : > { %v2171_v24 = vmul.f32 %v2092_v35, %v2015_v43 }
 0x3b0   : > { %3295 = vset.pattern.permute.xlu1 %v5104_v5  ;;  %v2016_v5 = vadd.f32 %v4481_v6, %v5158_v14 }
 0x3b1   : > { %v2383_v51 = vadd.f32 %v2357_v1, %v2171_v24  ;;  %2342 = vperm.xlu1 %3295, %v4739_v16   ;;  %v5163_v24 = vld [vmem:[#allocation28_spill] sm:$0xff] }
 0x3b2   : > { %v2172_v60 = vmul.f32 %v4807_v41, %v2016_v5  ;;  %v2017_v41 = vadd.f32 %v4481_v6, %v5163_v24  ;;  %v5166_v5 = vld [vmem:[#allocation30_spill] sm:$0xff]  ;;  %v5169_v24 = vld [vmem:[#allocation32_spill] sm:$0xff] }
 0x3b3   : > { %v2477_v29 = vpop.permute.xlu1 %2476  ;;  %v2018_v7 = vadd.f32 %v4481_v6, %v5166_v5 }
 0x3b4   : > { %v2543_v42 = vmul.f32 %v2477_v29, %v2413_v50  ;;  %v2359_v50 = vmul.f32 %v4825_v55, %v2229_v54  ;;  %v5168_v54 = vld [vmem:[#allocation33_spill] sm:$0xff] }
 0x3b5   : > { %3298 = vset.pattern.permute.xlu1 %v5106_v25  ;;  %v2307_v25 = vpop.permute.xlu0 %2306  ;;  %v2174_v18 = vmul.f32 %v2107_v44, %v2018_v7  ;;  %v5171_v7 = vld [vmem:[#allocation35_spill] sm:$0xff] }
 0x3b6   : > { %v2569_v52 = vadd.f32 %v2543_v42, %v2383_v51  ;;  %2714 = vperm.xlu1 %3298, %v4739_v16   ;;  %v2544_v16 = vmul.f32 %v4817_v59, %v2414_v12  ;;  %v2415_v59 = vadd.f32 %v4496_v19, %v5164_v28  ;;  %v5165_v42 = vld [vmem:[#allocation69_spill] sm:$0xff]  ;;  %v5167_v12 = vld [vmem:[#allocation31_spill] sm:$0xff]  ;;  %v2603_v28 = vadd.f32 %v4502_v30, %v4530_v27 }
 0x3b7   : > { %v2230_v55 = vadd.f32 %v4483_v15, %v5167_v12  ;;  %v2604_v27 = vadd.f32 %v4502_v30, %v4576_v37  ;;  %v2419_v37 = vadd.f32 %v4496_v19, %v4578_v38 }
 0x3b8   : > { %v2755_v53 = vadd.f32 %v2729_v9, %v2569_v52  ;;  %v2295_v8 = vpop.permute.xlu1 %2294  ;;  %v2601_v9 = vadd.f32 %v4502_v30, %v5165_v42 }
 0x3b9   : > { %v2358_v36 = vmul.f32 %v2295_v8, %v2228_v58  ;;  %v2679_v35 = vpop.permute.xlu0 %2678 }
 0x3ba   : > { %2781 = vst [vmem:[%s4532_s4 + $0x60] sm:$0xff] %v2755_v53  ;;  %v2731_v58 = vmul.f32 %v2671_v20, %v2601_v9  ;;  %v2416_v53 = vadd.f32 %v4496_v19, %v4504_v21  ;;  %v2733_v9 = vmul.f32 %v2679_v35, %v2603_v28  ;;  %v2420_v28 = vadd.f32 %v4496_v19, %v4601_v17 }
 0x3bb   : > { %v2384_v26 = vadd.f32 %v2358_v36, %v2172_v60 }
 0x3bd   : > { %v2570_v33 = vadd.f32 %v2544_v16, %v2384_v26  ;;  %v2667_v22 = vpop.permute.xlu1 %2666  ;;  %v2117_v48 = vpop.permute.xlu0 %2116  ;;  %v2602_v16 = vadd.f32 %v4502_v30, %v4522_v61  ;;  %v2546_v26 = vmul.f32 %v2489_v57, %v2416_v53  ;;  %v2417_v61 = vadd.f32 %v4496_v19, %v4528_v13 }
 0x3be   : > { %v2730_v43 = vmul.f32 %v2667_v22, %v2600_v40 }
 0x3c0   : > { %v2756_v1 = vadd.f32 %v2730_v43, %v2570_v33 }
 0x3c1   : > { %v2497_v8 = vpop.permute.xlu0 %2496 }
 0x3c2   : > { %2782 = vst [vmem:[%s4532_s4 + $0x68] sm:$0xff] %v2756_v1  ;;  %v2102_v45 = vpop.permute.xlu1 %2101  ;;  %v2231_v1 = vadd.f32 %v4483_v15, %v5168_v54 }
 0x3c3   : > { %v2173_v51 = vmul.f32 %v2102_v45, %v2017_v41  ;;  %v2019_v41 = vadd.f32 %v4481_v6, %v5169_v24 }
 0x3c4   : > { %v2361_v45 = vmul.f32 %v2307_v25, %v2231_v1  ;;  %v2232_v25 = vadd.f32 %v4483_v15, %v5171_v7  ;;  %v2605_v1 = vadd.f32 %v4502_v30, %v4582_v49 }
 0x3c5   : > { %v2385_v29 = vadd.f32 %v2359_v50, %v2173_v51  ;;  %v2315_v20 = vpop.permute.xlu0 %2314 }
 0x3c7   : > { %v2485_v52 = vpop.permute.xlu1 %2484 }
 0x3c8   : > { %v2545_v14 = vmul.f32 %v2485_v52, %v2415_v59 }
 0x3c9   : > { %v2687_v50 = vpop.permute.xlu0 %2686 }
 0x3ca   : > { %v2571_v62 = vadd.f32 %v2545_v14, %v2385_v29  ;;  %v5170_v14 = vld [vmem:[#allocation34_spill] sm:$0xff] }
 0x3cb   : > { %v2020_v5 = vadd.f32 %v4481_v6, %v5170_v14 }
 0x3cc   : > { %v2757_v60 = vadd.f32 %v2731_v58, %v2571_v62  ;;  %v2303_v36 = vpop.permute.xlu1 %2302  ;;  %v2418_v58 = vadd.f32 %v4496_v19, %v4553_v10  ;;  %v5173_v10 = vld [vmem:[#allocation37_spill] sm:$0xff] }
 0x3cd   : > { %v2360_v40 = vmul.f32 %v2303_v36, %v2230_v55  ;;  %v2127_v42 = vpop.permute.xlu0 %2126  ;;  %v2176_v12 = vmul.f32 %v2117_v48, %v2020_v5 }
 0x3ce   : > { %2783 = vst [vmem:[%s4532_s4 + $0x70] sm:$0xff] %v2757_v60  ;;  %v2548_v35 = vmul.f32 %v2497_v8, %v2418_v58 }
 0x3cf   : > { %v2386_v33 = vadd.f32 %v2360_v40, %v2174_v18 }
 0x3d1   : > { %v2572_v22 = vadd.f32 %v2546_v26, %v2386_v33  ;;  %v2675_v43 = vpop.permute.xlu1 %2674  ;;  %v2505_v53 = vpop.permute.xlu0 %2504  ;;  %v5172_v26 = vld [vmem:[#allocation36_spill] sm:$0xff] }
 0x3d2   : > { %v2732_v11 = vmul.f32 %v2675_v43, %v2602_v16  ;;  %v2021_v33 = vadd.f32 %v4481_v6, %v5172_v26 }
 0x3d4   : > { %v2758_v21 = vadd.f32 %v2732_v11, %v2572_v22  ;;  %v2233_v22 = vadd.f32 %v4483_v15, %v5173_v10 }
 0x3d5   : > { %v2323_v43 = vpop.permute.xlu0 %2322 }
 0x3d6   : > { %2784 = vst [vmem:[%s4532_s4 + $0x78] sm:$0xff] %v2758_v21  ;;  %v2112_v44 = vpop.permute.xlu1 %2111  ;;  %v2363_v11 = vmul.f32 %v2315_v20, %v2233_v22  ;;  %v5179_v22 = vld [vmem:[#allocation43_spill] sm:$0xff] }
 0x3d7   : > { %v2175_v51 = vmul.f32 %v2112_v44, %v2019_v41  ;;  %v2735_v44 = vmul.f32 %v2687_v50, %v2605_v1  ;;  %v2550_v50 = vmul.f32 %v2505_v53, %v2420_v28 }
 0x3d9   : > { %v2387_v57 = vadd.f32 %v2361_v45, %v2175_v51  ;;  %v2695_v21 = vpop.permute.xlu0 %2694  ;;  %v5174_v51 = vld [vmem:[#allocation38_spill] sm:$0xff] }
 0x3db   : > { %v2493_v59 = vpop.permute.xlu1 %2492 }
 0x3dc   : > { %v2547_v29 = vmul.f32 %v2493_v59, %v2417_v61  ;;  %v2022_v61 = vadd.f32 %v4481_v6, %v5174_v51 }
 0x3de   : > { %v2573_v52 = vadd.f32 %v2547_v29, %v2387_v57  ;;  %v5175_v57 = vld [vmem:[#allocation39_spill] sm:$0xff]  ;;  %v2178_v29 = vmul.f32 %v2127_v42, %v2022_v61  ;;  %v5180_v61 = vld [vmem:[#allocation44_spill] sm:$0xff] }
 0x3df   : > { %v2234_v20 = vadd.f32 %v4483_v15, %v5175_v57  ;;  %v5181_v57 = vld [vmem:[#allocation45_spill] sm:$0xff] }
 0x3e0   : > { %v2759_v13 = vadd.f32 %v2733_v9, %v2573_v52  ;;  %v2311_v62 = vpop.permute.xlu1 %2310  ;;  %v2137_v9 = vpop.permute.xlu0 %2136  ;;  %v2606_v52 = vadd.f32 %v4502_v30, %v4628_v4  ;;  %v2421_v4 = vadd.f32 %v4496_v19, %v4630_v0 }
 0x3e1   : > { %v2362_v55 = vmul.f32 %v2311_v62, %v2232_v25  ;;  %v5176_v62 = vld [vmem:[#allocation40_spill] sm:$0xff] }
 0x3e2   : > { %2785 = vst [vmem:[%s4532_s4 + $0x80] sm:$0xff] %v2759_v13  ;;  %v2023_v17 = vadd.f32 %v4481_v6, %v5176_v62 }
 0x3e3   : > { %v2388_v60 = vadd.f32 %v2362_v55, %v2176_v12  ;;  %v5177_v12 = vld [vmem:[#allocation41_spill] sm:$0xff] }
 0x3e4   : > { %v2513_v58 = vpop.permute.xlu0 %2512  ;;  %v2235_v55 = vadd.f32 %v4483_v15, %v5177_v12 }
 0x3e5   : > { %v2574_v36 = vadd.f32 %v2548_v35, %v2388_v60  ;;  %v2683_v18 = vpop.permute.xlu1 %2682 }
 0x3e6   : > { %v2734_v40 = vmul.f32 %v2683_v18, %v2604_v27  ;;  %v2365_v27 = vmul.f32 %v2323_v43, %v2235_v55  ;;  %v2236_v43 = vadd.f32 %v4483_v15, %v5179_v22 }
 0x3e8   : > { %v2760_v16 = vadd.f32 %v2734_v40, %v2574_v36  ;;  %v2331_v53 = vpop.permute.xlu0 %2330  ;;  %v2607_v36 = vadd.f32 %v4502_v30, %v4632_v32  ;;  %v2608_v32 = vadd.f32 %v4502_v30, %v4678_v47  ;;  %v2423_v47 = vadd.f32 %v4496_v19, %v4686_v39 }
 0x3ea   : > { %2786 = vst [vmem:[%s4532_s4 + $0x88] sm:$0xff] %v2760_v16  ;;  %v2122_v48 = vpop.permute.xlu1 %2121  ;;  %v2737_v16 = vmul.f32 %v2695_v21, %v2607_v36 }
 0x3eb   : > { %v2177_v54 = vmul.f32 %v2122_v48, %v2021_v33  ;;  %v5178_v33 = vld [vmem:[#allocation42_spill] sm:$0xff]  ;;  %v2422_v48 = vadd.f32 %v4496_v19, %v4660_v63  ;;  %v2025_v63 = vadd.f32 %v4481_v6, %v5180_v61 }
 0x3ec   : > { %v2024_v10 = vadd.f32 %v4481_v6, %v5178_v33  ;;  %v2703_v0 = vpop.permute.xlu0 %2702 }
 0x3ed   : > { %v2389_v8 = vadd.f32 %v2363_v11, %v2177_v54  ;;  %v2552_v1 = vmul.f32 %v2513_v58, %v2422_v48 }
 0x3ef   : > { %v2501_v24 = vpop.permute.xlu1 %2500 }
 0x3f0   : > { %v2549_v41 = vmul.f32 %v2501_v24, %v2419_v37  ;;  %v2180_v37 = vmul.f32 %v2137_v9, %v2024_v10  ;;  %v2147_v24 = vpop.permute.xlu0 %2146 }
 0x3f2   : > { %v2575_v45 = vadd.f32 %v2549_v41, %v2389_v8 }
 0x3f4   : > { %v2761_v38 = vadd.f32 %v2735_v44, %v2575_v45  ;;  %v2319_v59 = vpop.permute.xlu1 %2318 }
 0x3f5   : > { %v2364_v49 = vmul.f32 %v2319_v59, %v2234_v20  ;;  %v2237_v20 = vadd.f32 %v4483_v15, %v5181_v57  ;;  %v2521_v59 = vpop.permute.xlu0 %2520 }
 0x3f6   : > { %2787 = vst [vmem:[%s4532_s4 + $0x90] sm:$0xff] %v2761_v38 }
 0x3f7   : > { %v2390_v14 = vadd.f32 %v2364_v49, %v2178_v29  ;;  %v2367_v38 = vmul.f32 %v2331_v53, %v2237_v20  ;;  %v2609_v49 = vadd.f32 %v4502_v30, %v4688_v46  ;;  %v2610_v46 = vadd.f32 %v4502_v30, %v4741_v23 }
 0x3f8   : > { %v2425_v23 = vadd.f32 %v4496_v19, %v4748_v3  ;;  %v2426_v3 = vadd.f32 %v4496_v19, %v4760_v34 }
 0x3f9   : > { %v2576_v5 = vadd.f32 %v2550_v50, %v2390_v14  ;;  %v2691_v7 = vpop.permute.xlu1 %2690  ;;  %v2339_v14 = vpop.permute.xlu0 %2338 }
 0x3fa   : > { %v2736_v25 = vmul.f32 %v2691_v7, %v2606_v52 }
 0x3fc   : > { %v2762_v13 = vadd.f32 %v2736_v25, %v2576_v5  ;;  %v2739_v5 = vmul.f32 %v2703_v0, %v2609_v49  ;;  %v5182_v25 = vld [vmem:[#allocation46_spill] sm:$0xff]  ;;  %v2611_v0 = vadd.f32 %v4502_v30, %v4756_v31 }
 0x3fd   : > { %v2026_v58 = vadd.f32 %v4481_v6, %v5182_v25 }
 0x3fe   : > { %2788 = vst [vmem:[%s4532_s4 + $0x98] sm:$0xff] %v2762_v13  ;;  %v2132_v42 = vpop.permute.xlu1 %2131  ;;  %v5183_v13 = vld [vmem:[#allocation47_spill] sm:$0xff] }
 0x3ff   : > { %v2179_v35 = vmul.f32 %v2132_v42, %v2023_v17  ;;  %v2238_v62 = vadd.f32 %v4483_v15, %v5183_v13  ;;  %v2424_v17 = vadd.f32 %v4496_v19, %v4716_v56  ;;  %v2182_v55 = vmul.f32 %v2147_v24, %v2026_v58  ;;  %v5185_v56 = vld [vmem:[#allocation49_spill] sm:$0xff]  ;;  %v5187_v24 = vld [vmem:[#allocation51_spill] sm:$0xff] }
 0x401   : > { %v2391_v60 = vadd.f32 %v2365_v27, %v2179_v35  ;;  %v2554_v27 = vmul.f32 %v2521_v59, %v2424_v17  ;;  %v2157_v35 = vpop.permute.xlu0 %2156 }
 0x403   : > { %v2509_v18 = vpop.permute.xlu1 %2508 }
 0x404   : > { %v2551_v40 = vmul.f32 %v2509_v18, %v2421_v4 }
 0x405   : > { %v2529_v33 = vpop.permute.xlu0 %2528 }
 0x406   : > { %v2577_v26 = vadd.f32 %v2551_v40, %v2391_v60  ;;  %v5184_v40 = vld [vmem:[#allocation48_spill] sm:$0xff]  ;;  %v2556_v61 = vmul.f32 %v2529_v33, %v2426_v3 }
 0x408   : > { %v2763_v11 = vadd.f32 %v2737_v16, %v2577_v26  ;;  %v2327_v54 = vpop.permute.xlu1 %2326  ;;  %v2027_v16 = vadd.f32 %v4481_v6, %v5184_v40  ;;  %v2239_v26 = vadd.f32 %v4483_v15, %v5185_v56 }
 0x409   : > { %v2366_v8 = vmul.f32 %v2327_v54, %v2236_v43 }
 0x40a   : > { %2789 = vst [vmem:[%s4532_s4 + $0xa0] sm:$0xff] %v2763_v11  ;;  %v2369_v22 = vmul.f32 %v2339_v14, %v2239_v26  ;;  %v2711_v11 = vpop.permute.xlu0 %2710 }
 0x40b   : > { %v2392_v21 = vadd.f32 %v2366_v8, %v2180_v37  ;;  %v2741_v8 = vmul.f32 %v2711_v11, %v2611_v0 }
 0x40d   : > { %v2578_v41 = vadd.f32 %v2552_v1, %v2392_v21  ;;  %v2699_v44 = vpop.permute.xlu1 %2698  ;;  %v5186_v1 = vld [vmem:[#allocation50_spill] sm:$0xff] }
 0x40e   : > { %v2738_v45 = vmul.f32 %v2699_v44, %v2608_v32  ;;  %v2028_v21 = vadd.f32 %v4481_v6, %v5186_v1  ;;  %v2612_v6 = vadd.f32 %v4502_v30, %v4851_v2 }
 0x410   : > { %v2764_v51 = vadd.f32 %v2738_v45, %v2578_v41  ;;  %v2240_v41 = vadd.f32 %v4483_v15, %v5187_v24  ;;  %v2184_v31 = vmul.f32 %v2157_v35, %v2028_v21 }
 0x412   : > { %2790 = vst [vmem:[%s4532_s4 + $0xa8] sm:$0xff] %v2764_v51  ;;  %v2142_v28 = vpop.permute.xlu1 %2141 }
 0x413   : > { %v2181_v29 = vmul.f32 %v2142_v28, %v2025_v63 }
 0x415   : > { %v2393_v9 = vadd.f32 %v2367_v38, %v2181_v29 }
 0x417   : > { %v2517_v52 = vpop.permute.xlu1 %2516 }
 0x418   : > { %v2553_v50 = vmul.f32 %v2517_v52, %v2423_v47 }
 0x41a   : > { %v2579_v7 = vadd.f32 %v2553_v50, %v2393_v9 }
 0x41c   : > { %v2765_v39 = vadd.f32 %v2739_v5, %v2579_v7  ;;  %v2335_v12 = vpop.permute.xlu1 %2334 }
 0x41d   : > { %v2368_v42 = vmul.f32 %v2335_v12, %v2238_v62 }
 0x41e   : > { %2791 = vst [vmem:[%s4532_s4 + $0xb0] sm:$0xff] %v2765_v39 }
 0x41f   : > { %v2394_v4 = vadd.f32 %v2368_v42, %v2182_v55 }
 0x421   : > { %v2580_v53 = vadd.f32 %v2554_v27, %v2394_v4  ;;  %v2707_v60 = vpop.permute.xlu1 %2706 }
 0x422   : > { %v2740_v36 = vmul.f32 %v2707_v60, %v2610_v46 }
 0x424   : > { %v2766_v18 = vadd.f32 %v2740_v36, %v2580_v53 }
 0x426   : > { %2792 = vst [vmem:[%s4532_s4 + $0xb8] sm:$0xff] %v2766_v18  ;;  %v2152_v10 = vpop.permute.xlu1 %2151 }
 0x427   : > { %v2183_v43 = vmul.f32 %v2152_v10, %v2027_v16 }
 0x429   : > { %v2395_v48 = vadd.f32 %v2369_v22, %v2183_v43 }
 0x42b   : > { %v2525_v54 = vpop.permute.xlu1 %2524 }
 0x42c   : > { %v2555_v37 = vmul.f32 %v2525_v54, %v2425_v23 }
 0x42e   : > { %v2581_v32 = vadd.f32 %v2555_v37, %v2395_v48 }
 0x430   : > { %v2767_v44 = vadd.f32 %v2741_v8, %v2581_v32  ;;  %v2343_v45 = vpop.permute.xlu1 %2342 }
 0x431   : > { %v2370_v51 = vmul.f32 %v2343_v45, %v2240_v41 }
 0x432   : > { %2793 = vst [vmem:[%s4532_s4 + $0xc0] sm:$0xff] %v2767_v44 }
 0x433   : > { %v2396_v63 = vadd.f32 %v2370_v51, %v2184_v31 }
 0x435   : > { %v2582_v57 = vadd.f32 %v2556_v61, %v2396_v63  ;;  %v2715_v15 = vpop.permute.xlu1 %2714 }
 0x436   : > { %v2742_v20 = vmul.f32 %v2715_v15, %v2612_v6 }
 0x438   : > { %v2768_v19 = vadd.f32 %v2742_v20, %v2582_v57 }
 0x43a   : > { %2794 = vst [vmem:[%s4532_s4 + $0xc8] sm:$0xff] %v2768_v19 }
 0x43b   : > { %3501 = shalt.err (!%p3498_p5)
}
 0x43c   : > { %s3502_s21 = scalar_lea.hbm %s4987_s23, 3328  ;;  %s3506_s18 = scalar_lea.hbm %s5041_s3, 9984 }
 0x43d   : > { %p3503_p6 = scmp.ne.s32.totalorder %s4987_s23, %s3502_s21  ;;  %p3507_p2 = scmp.lt.u32.totalorder %s4987_s23, %s5041_s3 }
 0x43e   : > { %p3508_p4 = scmp.lt.u32.totalorder %s3506_s18, %s3502_s21  ;;  %p3510_p9 = scmp.lt.u32.totalorder %s3502_s21, %s4987_s23 }
 0x43f   : > { %p3504_p7 = pnand %p3503_p6, %p5188_p11 }
 0x440   : > { %p3509_p8 = por %p3508_p4, %p3507_p2 }
 0x441   : > { %p3505_p0 = pneg %p3504_p7 }
 0x442   : > { %p3511_p13 = por %p3510_p9, %p3509_p8 }
 0x444   : > { %p3512_p10 = pnand %p3511_p13, %p3505_p0 }
 0x446   : > { %3515 = shalt.err (!%p3512_p10)
}
 0x447   : > { %s3582_s4 = smov 128   ;;  %s3583_s7 = smov 384  }
 0x448   : > { %s3584_s10 = smov 8  }
 0x449   : > { %3124 = dma.vmem_to_hbm [thread:$0]  (%p5188_p11), %s4989_s9, 3328, %s4987_s23, %s2796_s15, %s3582_s4, %s3583_s7, %s3584_s10  }
 0x44a PF: > { %p3135_p12 = scmp.ge.s32.totalorder %s3570_s17, 2  ;;  %s2826_s22 = sand.u32 1, %s3550_s12  }
 0x44b   : > { %p5189_p1 = scmp.ne.s32.totalorder %s5057_s27, 0  ;;  %s2827_s28 = scalar_lea.sflag [#allocation5], %s2826_s22 }
 0x44d   : > { %p3131_p3 = pnand %p3135_p12, %p5189_p1 }
 0x44f   : > { %3545 = dma.done.wait (!%p3131_p3), %s2827_s28, 3328  }
 0x450   : > { %3547 = vsyncadd (!%p3131_p3), %s2827_s28, 4294963968  ;;  %s19_s17 = sadd.s32 1, %s3570_s17   ;;  %s5190_s12 = smov %s3554_s13 }
 0x451   : > { %p16_p5 = scmp.ge.s32.totalorder %s19_s17, 5   ;;  %s5191_s13 = smov %s3558_s14 }
 0x452   : > { %s5192_s14 = smov %s3661_s26  ;;  %s5193_s15 = smov %s3566_s16 }
 0x453   : > { %s5194_s16 = smov %s5196_s20  ;;  %18 = sbr.rel (!%p16_p5) target bundleno = 6 (0x6), region = 91 }
 0x45a   :  { %2832 = vsyncpa [#allocation4], 1 }
 0x45b   :  { %2834 = vsyncpa [#allocation4 + $0x1], 1 }
 0x45c   :  { %2835 = vsyncpa [#allocation5], 1 }
 0x45d   :  { %2837 = vsyncpa [#allocation5 + $0x1], 1 }

</bundles_post_ra>
